<compile_context>
chip_gen: v7x
topology: tpu7x:2x2x1
jax: 0.10.0
libtpu: 0.0.40
codegen_flags: <defaults>
</compile_context>

<pallas_src>
import jax
import jax.numpy as jnp
from jax import lax
from jax.experimental import pallas as pl
from jax.experimental.pallas import tpu as pltpu
import numpy as np

KERNEL_SIZE = 10
STRIDE = 4
LIN_IN = 998                                        # conv output length / Linear in-features
LIN_OUT = 1000                                      # Linear out-features
K_PAD = 1024                                        # lane-dense padded reduction dim
N_PAD = 1024                                        # lane-dense padded out-features
CONV_IN_LEN = (LIN_IN - 1) * STRIDE + KERNEL_SIZE   # 3998


def convlin_kernel(wc_ref, patches_ref, wlin_ref, beff_ref, o_ref):
    """One batch tile of fused Conv1d(1,1,10,4) + Linear(998,1000) + ReLU.

    wc_ref:      (10,)          f32 SMEM   conv weight taps
    patches_ref: (10, TM, 1024) bf16 VMEM  im2col'd input tile, tap axis outermost
    wlin_ref:    (1024, 1024)   bf16 VMEM  transposed + K/N-padded Linear weight (resident)
    beff_ref:    (1, 1024)      f32  VMEM  effective bias (conv bias folded in, N-padded)
    o_ref:       (TM, 1024)     f32  VMEM  output tile (lanes 1000..1023 stay zero)
    """
    # Conv1d reduction: 10 scalar-from-SMEM x vector FMAs on the VPU, f32 accumulation.
    # Per-tap ref loads keep only one (TM, 1024) slab live per step; the bf16->f32
    # upcast rides the same VALU pass.
    conv = wc_ref[0] * patches_ref[0].astype(jnp.float32)
    for k in range(1, KERNEL_SIZE):
        conv = conv + wc_ref[k] * patches_ref[k].astype(jnp.float32)

    # Linear on the MXU: bf16 inputs, f32 accumulate; then fused bias + ReLU.
    y = jnp.dot(conv.astype(jnp.bfloat16), wlin_ref[...],
                preferred_element_type=jnp.float32)
    y = y + beff_ref[...]                       # (1, 1024) broadcasts over (TM, 1024)
    o_ref[...] = jnp.maximum(y, 0.0)


def _im2col_taps(x2, ksize, stride, out_len):
    # (B, L) -> (ksize, B, out_len); patches[k, b, j] = x2[b, stride*j + k].
    # Tap axis outermost so kernel blocks are clean lane-major (TM, out_len) slabs.
    cols = [x2[:, k: k + stride * (out_len - 1) + 1: stride] for k in range(ksize)]
    return jnp.stack(cols, axis=0)


def prepare_params(wc, bc, wlin, blin):
    """One-time parameter prep, hoisted out of the per-call path.

    wlin: (1000, 998) -> (1024, 1024) bf16 (transposed, zero-padded rows/cols).
    Conv bias is folded into the effective linear bias in f32:
        y = W(conv_nb + bc) + b  ==  W conv_nb + (bc * rowsum(W) + b)
    Zero-padded weight columns keep padded output lanes exactly 0 after ReLU.
    """
    wlin_f32 = wlin.astype(jnp.float32)
    wlin_t = jnp.zeros((K_PAD, N_PAD), jnp.bfloat16)
    wlin_t = wlin_t.at[:LIN_IN, :LIN_OUT].set(wlin_f32.T.astype(jnp.bfloat16))

    b_eff = blin.astype(jnp.float32) + bc.astype(jnp.float32)[0] * jnp.sum(wlin_f32, axis=1)
    beff_p = jnp.zeros((1, N_PAD), jnp.float32)
    beff_p = beff_p.at[0, :LIN_OUT].set(b_eff)
    return wc.astype(jnp.float32), wlin_t, beff_p


def conv_lin_block(x, wc_f32, wlin_t, beff_p, *, tm=128):
    """x: (B, 1, 3998) f32; (wc_f32, wlin_t, beff_p) from prepare_params.

    Returns (B, 1, 1000) f32, matching the torch module's forward.
    """
    B, C, L = x.shape
    assert C == 1 and L == CONV_IN_LEN
    x2 = x[:, 0, :]                                           # (B, 3998)

    # Batch tile: single tile when B is small, else 128-row tiles (multiple of
    # the 8-sublane quantum; double-buffered bf16 tile + resident bf16 weight
    # fits comfortably even in v7x's 64 MiB VMEM).
    if B <= tm:
        tm = B
    num_tiles = pl.cdiv(B, tm)
    b_pad = num_tiles * tm
    if b_pad != B:
        x2 = jnp.pad(x2, ((0, b_pad - B), (0, 0)))

    # bf16 activations halve the dominant HBM traffic; accumulation stays f32.
    x2 = x2.astype(jnp.bfloat16)
    patches = _im2col_taps(x2, KERNEL_SIZE, STRIDE, LIN_IN)   # (10, b_pad, 998) bf16
    patches = jnp.pad(patches, ((0, 0), (0, 0), (0, K_PAD - LIN_IN)))  # -> (10, b_pad, 1024)

    out = pl.pallas_call(
        convlin_kernel,
        out_shape=jax.ShapeDtypeStruct((b_pad, N_PAD), jnp.float32),
        grid_spec=pltpu.PrefetchScalarGridSpec(
            num_scalar_prefetch=0,
            grid=(num_tiles,),
            in_specs=[
                pl.BlockSpec(memory_space=pltpu.MemorySpace.SMEM),      # wc (10,)
                pl.BlockSpec((KERNEL_SIZE, tm, K_PAD),
                             lambda i: (0, i, 0)),                      # patches tile
                pl.BlockSpec((K_PAD, N_PAD), lambda i: (0, 0)),         # resident weight
                pl.BlockSpec((1, N_PAD), lambda i: (0, 0)),             # effective bias
            ],
            out_specs=pl.BlockSpec((tm, N_PAD), lambda i: (i, 0)),
        ),
        compiler_params=pltpu.CompilerParams(
            dimension_semantics=("parallel",),          # megacore batch split on v7x
            vmem_limit_bytes=32 * 1024 * 1024,
        ),
    )(wc_f32, patches, wlin_t, beff_p)

    return out[:B, :LIN_OUT][:, None, :]                      # (B, 1, 1000)


def reference(x, wc, bc, wlin, blin):
    # Plain-JAX reference mirroring the PyTorch forward (f32 throughout).
    w = wc.reshape(1, 1, KERNEL_SIZE)
    conv = lax.conv_general_dilated(
        x, w, window_strides=(STRIDE,), padding="VALID",
        dimension_numbers=("NCH", "OIH", "NCH"))
    conv = conv + bc.reshape(1, 1, 1)                         # (B, 1, 998)
    y = jnp.einsum("bcn,mn->bcm", conv, wlin) + blin          # (B, 1, 1000)
    return jnp.maximum(y, 0.0)


def init_params(key):
    # Deterministic init with PyTorch-style uniform bounds (synthetic; no checkpoint).
    k1, k2, k3, k4 = jax.random.split(key, 4)
    bc_bound = 1.0 / np.sqrt(1 * KERNEL_SIZE)
    lin_bound = 1.0 / np.sqrt(LIN_IN)
    wc = jax.random.uniform(k1, (KERNEL_SIZE,), jnp.float32, -bc_bound, bc_bound)
    bc = jax.random.uniform(k2, (1,), jnp.float32, -bc_bound, bc_bound)
    wlin = jax.random.uniform(k3, (LIN_OUT, LIN_IN), jnp.float32, -lin_bound, lin_bound)
    blin = jax.random.uniform(k4, (LIN_OUT,), jnp.float32, -lin_bound, lin_bound)
    return wc, bc, wlin, blin


if __name__ == "__main__":
    key = jax.random.PRNGKey(0)
    kp, kx = jax.random.split(key)
    wc, bc, wlin, blin = init_params(kp)

    # One-time weight prep (transpose + bf16 cast + lane padding + bias folding),
    # hoisted out of the per-call path.
    wc_f32, wlin_t, beff_p = prepare_params(wc, bc, wlin, blin)

    B = 2
    x = jax.random.normal(kx, (B, 1, CONV_IN_LEN), dtype=jnp.float32)

    out = conv_lin_block(x, wc_f32, wlin_t, beff_p)
    out = jax.block_until_ready(out)

    ref = reference(x, wc, bc, wlin, blin)
    assert out.shape == (B, 1, LIN_OUT), out.shape
    assert jnp.allclose(out, ref, atol=2e-2, rtol=2e-2), (
        f"max abs diff {float(jnp.max(jnp.abs(out - ref)))}")

    print("KERNEL_OK")
</pallas_src>

<mosaic_0001>
module attributes {stable_mosaic.version = 11 : i64} {
  func.func @convlin_kernel(%arg0: i32, %arg1: memref<10xf32, #tpu.memory_space<smem>>, %arg2: memref<10x2x1024xbf16, #tpu.memory_space<vmem>>, %arg3: memref<1024x1024xbf16, #tpu.memory_space<vmem>>, %arg4: memref<1x1024xf32, #tpu.memory_space<vmem>>, %arg5: memref<2x1024xf32, #tpu.memory_space<vmem>>) attributes {dimension_semantics = [#tpu.dimension_semantics<parallel>], iteration_bounds = array<i64: 1>, scalar_prefetch = 0 : i64, scratch_operands = 0 : i64, tpu.core_type = #tpu.core_type<tc>, window_params = [{transform_indices = @transform_0, window_bounds = array<i64: 10>}, {transform_indices = @transform_1, window_bounds = array<i64: 10, 2, 1024>}, {pipeline_mode = #tpu.pipeline_mode<synchronous>, transform_indices = @transform_2, window_bounds = array<i64: 1024, 1024>}, {pipeline_mode = #tpu.pipeline_mode<synchronous>, transform_indices = @transform_3, window_bounds = array<i64: 1, 1024>}, {transform_indices = @transform_4, window_bounds = array<i64: 2, 1024>}]} {
    %c0 = arith.constant 0 : index
    %0 = memref.load %arg1[%c0] : memref<10xf32, #tpu.memory_space<smem>>
    %c0_0 = arith.constant 0 : index
    %c0_1 = arith.constant 0 : index
    %c0_2 = arith.constant 0 : index
    %1 = vector.load %arg2[%c0_0, %c0_1, %c0_2] : memref<10x2x1024xbf16, #tpu.memory_space<vmem>>, vector<1x2x1024xbf16>
    %2 = vector.shape_cast %1 : vector<1x2x1024xbf16> to vector<2x1024xbf16>
    %3 = arith.extf %2 : vector<2x1024xbf16> to vector<2x1024xf32>
    %4 = vector.broadcast %0 : f32 to vector<2x1024xf32>
    %5 = arith.mulf %4, %3 : vector<2x1024xf32>
    %c1 = arith.constant 1 : index
    %6 = memref.load %arg1[%c1] : memref<10xf32, #tpu.memory_space<smem>>
    %c1_3 = arith.constant 1 : index
    %c0_4 = arith.constant 0 : index
    %c0_5 = arith.constant 0 : index
    %7 = vector.load %arg2[%c1_3, %c0_4, %c0_5] : memref<10x2x1024xbf16, #tpu.memory_space<vmem>>, vector<1x2x1024xbf16>
    %8 = vector.shape_cast %7 : vector<1x2x1024xbf16> to vector<2x1024xbf16>
    %9 = arith.extf %8 : vector<2x1024xbf16> to vector<2x1024xf32>
    %10 = vector.broadcast %6 : f32 to vector<2x1024xf32>
    %11 = arith.mulf %10, %9 : vector<2x1024xf32>
    %12 = arith.addf %5, %11 : vector<2x1024xf32>
    %c2 = arith.constant 2 : index
    %13 = memref.load %arg1[%c2] : memref<10xf32, #tpu.memory_space<smem>>
    %c2_6 = arith.constant 2 : index
    %c0_7 = arith.constant 0 : index
    %c0_8 = arith.constant 0 : index
    %14 = vector.load %arg2[%c2_6, %c0_7, %c0_8] : memref<10x2x1024xbf16, #tpu.memory_space<vmem>>, vector<1x2x1024xbf16>
    %15 = vector.shape_cast %14 : vector<1x2x1024xbf16> to vector<2x1024xbf16>
    %16 = arith.extf %15 : vector<2x1024xbf16> to vector<2x1024xf32>
    %17 = vector.broadcast %13 : f32 to vector<2x1024xf32>
    %18 = arith.mulf %17, %16 : vector<2x1024xf32>
    %19 = arith.addf %12, %18 : vector<2x1024xf32>
    %c3 = arith.constant 3 : index
    %20 = memref.load %arg1[%c3] : memref<10xf32, #tpu.memory_space<smem>>
    %c3_9 = arith.constant 3 : index
    %c0_10 = arith.constant 0 : index
    %c0_11 = arith.constant 0 : index
    %21 = vector.load %arg2[%c3_9, %c0_10, %c0_11] : memref<10x2x1024xbf16, #tpu.memory_space<vmem>>, vector<1x2x1024xbf16>
    %22 = vector.shape_cast %21 : vector<1x2x1024xbf16> to vector<2x1024xbf16>
    %23 = arith.extf %22 : vector<2x1024xbf16> to vector<2x1024xf32>
    %24 = vector.broadcast %20 : f32 to vector<2x1024xf32>
    %25 = arith.mulf %24, %23 : vector<2x1024xf32>
    %26 = arith.addf %19, %25 : vector<2x1024xf32>
    %c4 = arith.constant 4 : index
    %27 = memref.load %arg1[%c4] : memref<10xf32, #tpu.memory_space<smem>>
    %c4_12 = arith.constant 4 : index
    %c0_13 = arith.constant 0 : index
    %c0_14 = arith.constant 0 : index
    %28 = vector.load %arg2[%c4_12, %c0_13, %c0_14] : memref<10x2x1024xbf16, #tpu.memory_space<vmem>>, vector<1x2x1024xbf16>
    %29 = vector.shape_cast %28 : vector<1x2x1024xbf16> to vector<2x1024xbf16>
    %30 = arith.extf %29 : vector<2x1024xbf16> to vector<2x1024xf32>
    %31 = vector.broadcast %27 : f32 to vector<2x1024xf32>
    %32 = arith.mulf %31, %30 : vector<2x1024xf32>
    %33 = arith.addf %26, %32 : vector<2x1024xf32>
    %c5 = arith.constant 5 : index
    %34 = memref.load %arg1[%c5] : memref<10xf32, #tpu.memory_space<smem>>
    %c5_15 = arith.constant 5 : index
    %c0_16 = arith.constant 0 : index
    %c0_17 = arith.constant 0 : index
    %35 = vector.load %arg2[%c5_15, %c0_16, %c0_17] : memref<10x2x1024xbf16, #tpu.memory_space<vmem>>, vector<1x2x1024xbf16>
    %36 = vector.shape_cast %35 : vector<1x2x1024xbf16> to vector<2x1024xbf16>
    %37 = arith.extf %36 : vector<2x1024xbf16> to vector<2x1024xf32>
    %38 = vector.broadcast %34 : f32 to vector<2x1024xf32>
    %39 = arith.mulf %38, %37 : vector<2x1024xf32>
    %40 = arith.addf %33, %39 : vector<2x1024xf32>
    %c6 = arith.constant 6 : index
    %41 = memref.load %arg1[%c6] : memref<10xf32, #tpu.memory_space<smem>>
    %c6_18 = arith.constant 6 : index
    %c0_19 = arith.constant 0 : index
    %c0_20 = arith.constant 0 : index
    %42 = vector.load %arg2[%c6_18, %c0_19, %c0_20] : memref<10x2x1024xbf16, #tpu.memory_space<vmem>>, vector<1x2x1024xbf16>
    %43 = vector.shape_cast %42 : vector<1x2x1024xbf16> to vector<2x1024xbf16>
    %44 = arith.extf %43 : vector<2x1024xbf16> to vector<2x1024xf32>
    %45 = vector.broadcast %41 : f32 to vector<2x1024xf32>
    %46 = arith.mulf %45, %44 : vector<2x1024xf32>
    %47 = arith.addf %40, %46 : vector<2x1024xf32>
    %c7 = arith.constant 7 : index
    %48 = memref.load %arg1[%c7] : memref<10xf32, #tpu.memory_space<smem>>
    %c7_21 = arith.constant 7 : index
    %c0_22 = arith.constant 0 : index
    %c0_23 = arith.constant 0 : index
    %49 = vector.load %arg2[%c7_21, %c0_22, %c0_23] : memref<10x2x1024xbf16, #tpu.memory_space<vmem>>, vector<1x2x1024xbf16>
    %50 = vector.shape_cast %49 : vector<1x2x1024xbf16> to vector<2x1024xbf16>
    %51 = arith.extf %50 : vector<2x1024xbf16> to vector<2x1024xf32>
    %52 = vector.broadcast %48 : f32 to vector<2x1024xf32>
    %53 = arith.mulf %52, %51 : vector<2x1024xf32>
    %54 = arith.addf %47, %53 : vector<2x1024xf32>
    %c8 = arith.constant 8 : index
    %55 = memref.load %arg1[%c8] : memref<10xf32, #tpu.memory_space<smem>>
    %c8_24 = arith.constant 8 : index
    %c0_25 = arith.constant 0 : index
    %c0_26 = arith.constant 0 : index
    %56 = vector.load %arg2[%c8_24, %c0_25, %c0_26] : memref<10x2x1024xbf16, #tpu.memory_space<vmem>>, vector<1x2x1024xbf16>
    %57 = vector.shape_cast %56 : vector<1x2x1024xbf16> to vector<2x1024xbf16>
    %58 = arith.extf %57 : vector<2x1024xbf16> to vector<2x1024xf32>
    %59 = vector.broadcast %55 : f32 to vector<2x1024xf32>
    %60 = arith.mulf %59, %58 : vector<2x1024xf32>
    %61 = arith.addf %54, %60 : vector<2x1024xf32>
    %c9 = arith.constant 9 : index
    %62 = memref.load %arg1[%c9] : memref<10xf32, #tpu.memory_space<smem>>
    %c9_27 = arith.constant 9 : index
    %c0_28 = arith.constant 0 : index
    %c0_29 = arith.constant 0 : index
    %63 = vector.load %arg2[%c9_27, %c0_28, %c0_29] : memref<10x2x1024xbf16, #tpu.memory_space<vmem>>, vector<1x2x1024xbf16>
    %64 = vector.shape_cast %63 : vector<1x2x1024xbf16> to vector<2x1024xbf16>
    %65 = arith.extf %64 : vector<2x1024xbf16> to vector<2x1024xf32>
    %66 = vector.broadcast %62 : f32 to vector<2x1024xf32>
    %67 = arith.mulf %66, %65 : vector<2x1024xf32>
    %68 = arith.addf %61, %67 : vector<2x1024xf32>
    %69 = arith.truncf %68 : vector<2x1024xf32> to vector<2x1024xbf16>
    %c0_30 = arith.constant 0 : index
    %c0_31 = arith.constant 0 : index
    %70 = vector.load %arg3[%c0_30, %c0_31] : memref<1024x1024xbf16, #tpu.memory_space<vmem>>, vector<1024x1024xbf16>
    %cst = arith.constant dense<0.000000e+00> : vector<2x1024xf32>
    %71 = tpu.matmul %69, %70, %cst {dimension_numbers = #tpu.dot_dimension_numbers<[1], [0], [0], [1], [0, 0, 1, 1], [], []>} : vector<2x1024xbf16>, vector<1024x1024xbf16>, vector<2x1024xf32> -> vector<2x1024xf32>
    %c0_32 = arith.constant 0 : index
    %c0_33 = arith.constant 0 : index
    %72 = vector.load %arg4[%c0_32, %c0_33] : memref<1x1024xf32, #tpu.memory_space<vmem>>, vector<1x1024xf32>
    %73 = vector.broadcast %72 : vector<1x1024xf32> to vector<2x1024xf32>
    %74 = arith.addf %71, %73 : vector<2x1024xf32>
    %cst_34 = arith.constant 0.000000e+00 : f32
    %75 = vector.broadcast %cst_34 : f32 to vector<2x1024xf32>
    %76 = arith.maximumf %74, %75 : vector<2x1024xf32>
    %c0_35 = arith.constant 0 : index
    %c0_36 = arith.constant 0 : index
    %77 = vector.load %arg5[%c0_35, %c0_36] : memref<2x1024xf32, #tpu.memory_space<vmem>>, vector<2x1024xf32>
    tpu.vector_store %arg5[%c0_35, %c0_36], %76 {strides = array<i32>} : memref<2x1024xf32, #tpu.memory_space<vmem>>, vector<2x1024xf32>,
    return
  }
  func.func @transform_0(%arg0: i32) -> i32 {
    %c0_i32 = arith.constant 0 : i32
    %c0_i32_0 = arith.constant 0 : i32
    return %c0_i32 : i32
  }
  func.func @transform_1(%arg0: i32) -> (i32, i32, i32) {
    %c0_i32 = arith.constant 0 : i32
    %c0_i32_0 = arith.constant 0 : i32
    %c0_i32_1 = arith.constant 0 : i32
    return %c0_i32, %arg0, %c0_i32_0 : i32, i32, i32
  }
  func.func @transform_2(%arg0: i32) -> (i32, i32) {
    %c0_i32 = arith.constant 0 : i32
    %c0_i32_0 = arith.constant 0 : i32
    %c0_i32_1 = arith.constant 0 : i32
    return %c0_i32, %c0_i32_0 : i32, i32
  }
  func.func @transform_3(%arg0: i32) -> (i32, i32) {
    %c0_i32 = arith.constant 0 : i32
    %c0_i32_0 = arith.constant 0 : i32
    %c0_i32_1 = arith.constant 0 : i32
    return %c0_i32, %c0_i32_0 : i32, i32
  }
  func.func @transform_4(%arg0: i32) -> (i32, i32) {
    %c0_i32 = arith.constant 0 : i32
    %c0_i32_0 = arith.constant 0 : i32
    return %arg0, %c0_i32 : i32, i32
  }
}

</mosaic_0001>

<bundles_post_ra>
// kernel: tpu_custom_call.1
= control target key start
LH: loop header
LB: loop body
LE: loop exit
PB: predicated region body
PF: predicated region fallthrough
CT: control target
= control target key end

     0   :  { %9 = vsyncpa [#allocation5], 0  ;;  %s5072_s0 = inlined_call_operand.hbm [shape: f32[10], index: 0, kind: input, shape index: {}]   ;;  %s5073_s1 = inlined_call_operand.hbm [shape: bf16[10,2,1024], index: 1, kind: input, shape index: {}]   ;;  %s5074_s2 = inlined_call_operand.hbm [shape: bf16[1024,1024], index: 2, kind: input, shape index: {}]   ;;  %s5075_s3 = inlined_call_operand.hbm [shape: f32[1,1024], index: 3, kind: input, shape index: {}]   ;;  %s5076_s4 = inlined_call_operand.hbm [shape: f32[2,1024], index: 4, kind: output, shape index: {}]  }
   0x1   :  { %10 = vsyncpa [#allocation3], 0 }
   0x2   :  { %11 = vsyncpa [#allocation8], 0 }
   0x3   :  { %12 = vsyncpa [#allocation4], 0  ;;  %s4751_s15 = smov [#allocation7]   ;;  %s4645_s19 = scalar_lea.hbm %s5074_s2, 65536 }
   0x4   :  { %s38_s16 = sshll.u32 %s4751_s15, 4  ;;  %p4646_p0 = scmp.ne.s32.totalorder %s5074_s2, %s4645_s19  ;;  %s39_s16 = int_to_ptr.vmem [resolvable:$true] %s38_s16 }
   0x5   :  { %p4649_p1 = scmp.lt.u32.totalorder %s4645_s19, %s5074_s2 }
   0x7   :  { %p4651_p2 = pnand %p4649_p1, %p4646_p0 }
   0x9   :  { %4654 = shalt.err (!%p4651_p2)
}
   0xa   :  { %s4655_s24 = scalar_lea.vmem %s39_s16, 65536  ;;  %p4660_p4 = scmp.lt.s32.totalorder %s39_s16, %s39_s16 }
   0xb   :  { %p4656_p3 = scmp.ne.s32.totalorder %s39_s16, %s4655_s24  ;;  %p4661_p5 = scmp.lt.s32.totalorder %s4655_s24, %s4655_s24 }
   0xd   :  { %p4662_p6 = por %p4661_p5, %p4660_p4 }
   0xf   :  { %p4663_p7 = pnand %p4662_p6, %p4656_p3 }
  0x11   :  { %4666 = shalt.err (!%p4663_p7)
}
  0x12   :  { %s4752_s25 = smov 512   ;;  %s4753_s26 = smov 32  }
  0x13   :  { %44 = dma.hbm_to_vmem [thread:$0]  %s5074_s2, 65536, %s39_s16, [#allocation8], %s4752_s25, %s4752_s25, %s4753_s26  }
  0x14   :  { %s4667_s5 = scalar_lea.hbm %s5072_s0, 16 }
  0x15   :  { %p4668_p8 = scmp.ne.s32.totalorder %s5072_s0, %s4667_s5  ;;  %p4671_p9 = scmp.lt.u32.totalorder %s4667_s5, %s5072_s0 }
  0x17   :  { %p4673_p10 = pnand %p4671_p9, %p4668_p8 }
  0x19   :  { %4676 = shalt.err (!%p4673_p10)
}
  0x1a   :  { %s4754_s10 = smov [#allocation2]   ;;  %s4755_s2 = smov [#allocation6]  }
  0x1b   :  { %20 = dma.hbm_to_smem %s5072_s0, 16, %s4754_s10, [#allocation5]  }
  0x1c   :  { %s26_s13 = sshll.u32 %s4755_s2, 4  ;;  %s4677_s16 = scalar_lea.hbm %s5073_s1, 1280  ;;  %s27_s13 = int_to_ptr.vmem [resolvable:$true] %s26_s13 }
  0x1d   :  { %p4678_p11 = scmp.ne.s32.totalorder %s5073_s1, %s4677_s16  ;;  %p4681_p12 = scmp.lt.u32.totalorder %s4677_s16, %s5073_s1 }
  0x1f   :  { %p4683_p13 = pnand %p4681_p12, %p4678_p11 }
  0x21   :  { %4686 = shalt.err (!%p4683_p13)
}
  0x22   :  { %s4687_s21 = scalar_lea.vmem %s27_s13, 1280  ;;  %p4692_p1 = scmp.lt.s32.totalorder %s27_s13, %s27_s13 }
  0x23   :  { %p4688_p0 = scmp.ne.s32.totalorder %s27_s13, %s4687_s21  ;;  %p4693_p2 = scmp.lt.s32.totalorder %s4687_s21, %s4687_s21 }
  0x25   :  { %p4694_p3 = por %p4693_p2, %p4692_p1 }
  0x27   :  { %p4695_p4 = pnand %p4694_p3, %p4688_p0 }
  0x29   :  { %4698 = shalt.err (!%p4695_p4)
}
  0x2a   :  { %s4756_s0 = smov 128   ;;  %s4757_s22 = smov 8  }
  0x2b   :  { %32 = dma.hbm_to_vmem [thread:$0]  %s5073_s1, 1280, %s27_s13, [#allocation3], %s4756_s0, %s4756_s0, %s4757_s22  }
  0x2c   :  { %s4758_s25 = smov [#allocation9]   ;;  %s4699_s29 = scalar_lea.hbm %s5075_s3, 128 }
  0x2d   :  { %s51_s26 = sshll.u32 %s4758_s25, 4  ;;  %p4700_p5 = scmp.ne.s32.totalorder %s5075_s3, %s4699_s29  ;;  %s52_s26 = int_to_ptr.vmem [resolvable:$true] %s51_s26 }
  0x2e   :  { %p4703_p6 = scmp.lt.u32.totalorder %s4699_s29, %s5075_s3 }
  0x30   :  { %p4705_p7 = pnand %p4703_p6, %p4700_p5 }
  0x32   :  { %4708 = shalt.err (!%p4705_p7)
}
  0x33   :  { %s4709_s8 = scalar_lea.vmem %s52_s26, 128  ;;  %p4714_p9 = scmp.lt.s32.totalorder %s52_s26, %s52_s26 }
  0x34   :  { %p4710_p8 = scmp.ne.s32.totalorder %s52_s26, %s4709_s8  ;;  %p4715_p10 = scmp.lt.s32.totalorder %s4709_s8, %s4709_s8 }
  0x36   :  { %p4716_p11 = por %p4715_p10, %p4714_p9 }
  0x38   :  { %p4717_p12 = pnand %p4716_p11, %p4710_p8 }
  0x3a   :  { %4720 = shalt.err (!%p4717_p12)
}
  0x3b   :  { %54 = dma.hbm_to_vmem [thread:$0]  %s5075_s3, 128, %s52_s26, [#allocation8]  }
  0x3c   :  { %4743 = dma.done.wait [#allocation5], 16  }
  0x3d   :  { %4744 = vsyncadd [#allocation5], 4294967280 }
  0x3e   :  { %4745 = dma.done.wait [#allocation3], 1280  }
  0x3f   :  { %4746 = vsyncadd [#allocation3], 4294966016 }
  0x40   :  { %4747 = dma.done.wait [#allocation8], 65664  }
  0x41   :  { %4748 = vsyncadd [#allocation8], 4294901632 }
  0x42   :  { %67 = sfence }
  0x43   :  { %v217_v0 = vld [vmem:[#allocation7] sm:$0xff]  ;;  %v218_v2 = vld [vmem:[#allocation7 + $0x8] sm:$0xff]  ;;  %s4834_s3 = sld [smem:[#allocation2]]  ;;  %s4836_s10 = sld [smem:[#allocation2 + $0x1]]  ;;  %v4850_v55 = vld [vmem:[#allocation6] sm:$0xff] }
  0x44   :  { %v221_v1 = vld [vmem:[#allocation7 + $0x20] sm:$0xff]  ;;  %v222_v4 = vld [vmem:[#allocation7 + $0x28] sm:$0xff]  ;;  %s4838_s11 = sld [smem:[#allocation2 + $0x2]]  ;;  %s4840_s12 = sld [smem:[#allocation2 + $0x3]]  ;;  %v4853_v57 = vld [vmem:[#allocation6 + $0x8] sm:$0xff]  ;;  %v70_v60 = vunpack.c.l.bf16 %v4850_v55 }
  0x45   :  { %v4068_v3 = vcombine.high %v217_v0, %v221_v1  ;;  %v4067_v5 = vcombine.low %v217_v0, %v221_v1  ;;  %v225_v6 = vld [vmem:[#allocation7 + $0x40] sm:$0xff]  ;;  %v4070_v8 = vcombine.high %v218_v2, %v222_v4  ;;  %v4069_v9 = vcombine.low %v218_v2, %v222_v4  ;;  %v226_v11 = vld [vmem:[#allocation7 + $0x48] sm:$0xff]  ;;  %s4842_s2 = sld [smem:[#allocation2 + $0x4]]  ;;  %s4844_s13 = sld [smem:[#allocation2 + $0x5]]  ;;  %v4865_v1 = vld [vmem:[#allocation6 + $0x20] sm:$0xff] }
  0x46   :  { %v229_v7 = vld [vmem:[#allocation7 + $0x60] sm:$0xff]  ;;  %v230_v12 = vld [vmem:[#allocation7 + $0x68] sm:$0xff]  ;;  %s4856_s14 = sld [smem:[#allocation2 + $0x6]]  ;;  %v78_v61 = vunpack.c.l.bf16 %v4853_v57  ;;  %s4872_s15 = sld [smem:[#allocation2 + $0x7]] }
  0x47   :  { %v4076_v10 = vcombine.high %v225_v6, %v229_v7  ;;  %v233_v13 = vld [vmem:[#allocation7 + $0x80] sm:$0xff]  ;;  %3331 = vmatprep.subr.bf16.mxu0 %v4068_v3  ;;  %v4078_v14 = vcombine.high %v226_v11, %v230_v12  ;;  %v234_v16 = vld [vmem:[#allocation7 + $0x88] sm:$0xff]  ;;  %3495 = vmatprep.subr.bf16.mxu1 %v4070_v8  ;;  %v4075_v18 = vcombine.low %v225_v6, %v229_v7  ;;  %v4870_v7 = vld [vmem:[#allocation6 + $0x28] sm:$0xff]  ;;  %s4886_s16 = sld [smem:[#allocation2 + $0x8]]  ;;  %s4894_s17 = sld [smem:[#allocation2 + $0x9]] }
  0x48   :  { %v237_v15 = vld [vmem:[#allocation7 + $0xa0] sm:$0xff]  ;;  %v238_v17 = vld [vmem:[#allocation7 + $0xa8] sm:$0xff]  ;;  %3332 = vmatpush1.bf16.msra.mxu0 %v4067_v5  ;;  %3496 = vmatpush1.bf16.msra.mxu1 %v4069_v9  ;;  %v4077_v19 = vcombine.low %v226_v11, %v230_v12  ;;  %v108_v11 = vunpack.c.l.bf16 %v4865_v1  ;;  %s4760_s18 = smov [#allocation10]  }
  0x49   :  { %3333 = vmatprep.subr.bf16.mxu0 %v4076_v10  ;;  %v4084_v20 = vcombine.high %v233_v13, %v237_v15  ;;  %3497 = vmatprep.subr.bf16.mxu1 %v4078_v14  ;;  %v4086_v21 = vcombine.high %v234_v16, %v238_v17  ;;  %v241_v22 = vld [vmem:[#allocation7 + $0xc0] sm:$0xff]  ;;  %v242_v24 = vld [vmem:[#allocation7 + $0xc8] sm:$0xff]  ;;  %v4083_v26 = vcombine.low %v233_v13, %v237_v15  ;;  %v72_v56 = vstv %s4834_s3  ;;  %s4047_s19 = sshll.u32 %s4760_s18, 4  ;;  %s4048_s19 = int_to_ptr.vmem [resolvable:$true] %s4047_s19 }
  0x4a   :  { %v245_v23 = vld [vmem:[#allocation7 + $0xe0] sm:$0xff]  ;;  %v246_v25 = vld [vmem:[#allocation7 + $0xe8] sm:$0xff]  ;;  %v4085_v27 = vcombine.low %v234_v16, %v238_v17  ;;  %v80_v58 = vstv %s4836_s10  ;;  %v90_v63 = vstv %s4838_s11  ;;  %v100_v6 = vstv %s4840_s12  ;;  %s4721_s20 = scalar_lea.vmem %s4048_s19, 256  ;;  %p4726_p0 = scmp.lt.s32.totalorder %s4048_s19, %s4048_s19 }
  0x4b   :  { %v4092_v28 = vcombine.high %v241_v22, %v245_v23  ;;  %v4094_v29 = vcombine.high %v242_v24, %v246_v25  ;;  %v249_v30 = vld [vmem:[#allocation7 + $0x100] sm:$0xff]  ;;  %v250_v32 = vld [vmem:[#allocation7 + $0x108] sm:$0xff]  ;;  %v4091_v34 = vcombine.low %v241_v22, %v245_v23  ;;  %v4093_v35 = vcombine.low %v242_v24, %v246_v25  ;;  %p4722_p13 = scmp.ne.s32.totalorder %s4048_s19, %s4721_s20  ;;  %p4727_p1 = scmp.lt.s32.totalorder %s4721_s20, %s4721_s20 }
  0x4c   :  { %3334 = vmatpush1.bf16.msra.mxu0 %v4075_v18  ;;  %3498 = vmatpush1.bf16.msra.mxu1 %v4077_v19  ;;  %v253_v31 = vld [vmem:[#allocation7 + $0x120] sm:$0xff]  ;;  %v254_v33 = vld [vmem:[#allocation7 + $0x128] sm:$0xff]  ;;  %v73_v9 = vmul.f32 %v72_v56, %v70_v60  ;;  %v81_v10 = vmul.f32 %v80_v58, %v78_v61  ;;  %v110_v15 = vstv %s4842_s2  ;;  %v118_v22 = vunpack.c.l.bf16 %v4870_v7 }
  0x4d   :  { %3335 = vmatprep.subr.bf16.mxu0 %v4084_v20  ;;  %3499 = vmatprep.subr.bf16.mxu1 %v4086_v21  ;;  %v4100_v36 = vcombine.high %v249_v30, %v253_v31  ;;  %v4102_v37 = vcombine.high %v250_v32, %v254_v33  ;;  %v257_v38 = vld [vmem:[#allocation7 + $0x140] sm:$0xff]  ;;  %v258_v40 = vld [vmem:[#allocation7 + $0x148] sm:$0xff]  ;;  %v4099_v42 = vcombine.low %v249_v30, %v253_v31  ;;  %v120_v25 = vstv %s4844_s13  ;;  %p4728_p2 = por %p4727_p1, %p4726_p0 }
  0x4e   :  { %v261_v39 = vld [vmem:[#allocation7 + $0x160] sm:$0xff]  ;;  %v262_v41 = vld [vmem:[#allocation7 + $0x168] sm:$0xff]  ;;  %v4101_v43 = vcombine.low %v250_v32, %v254_v33  ;;  %v83_v20 = vadd.f32 %v81_v10, %v73_v9  ;;  %v130_v33 = vstv %s4856_s14  ;;  %v160_v9 = vstv %s4894_s17 }
  0x4f   :  { %v4108_v44 = vcombine.high %v257_v38, %v261_v39  ;;  %v4110_v45 = vcombine.high %v258_v40, %v262_v41  ;;  %v265_v46 = vld [vmem:[#allocation7 + $0x180] sm:$0xff]  ;;  %v266_v48 = vld [vmem:[#allocation7 + $0x188] sm:$0xff]  ;;  %v4107_v50 = vcombine.low %v257_v38, %v261_v39  ;;  %v4109_v52 = vcombine.low %v258_v40, %v262_v41  ;;  %p4729_p3 = pnand %p4728_p2, %p4722_p13 }
  0x50   :  { %3336 = vmatpush1.bf16.msra.mxu0 %v4083_v26  ;;  %3500 = vmatpush1.bf16.msra.mxu1 %v4085_v27  ;;  %v269_v47 = vld [vmem:[#allocation7 + $0x1a0] sm:$0xff]  ;;  %v270_v49 = vld [vmem:[#allocation7 + $0x1a8] sm:$0xff]  ;;  %v121_v39 = vmul.f32 %v120_v25, %v118_v22 }
  0x51   :  { %3337 = vmatprep.subr.bf16.mxu0 %v4092_v28  ;;  %3501 = vmatprep.subr.bf16.mxu1 %v4094_v29  ;;  %v4846_v51 = vld [vmem:[#allocation7 + $0x1c0] sm:$0xff]  ;;  %v4116_v53 = vcombine.high %v265_v46, %v269_v47  ;;  %v4118_v59 = vcombine.high %v266_v48, %v270_v49  ;;  %v4863_v0 = vld [vmem:[#allocation6 + $0x18] sm:$0xff]  ;;  %v4115_v8 = vcombine.low %v265_v46, %v269_v47  ;;  %v171_v46 = vlaneseq }
  0x52   :  { %v4848_v54 = vld [vmem:[#allocation7 + $0x1e0] sm:$0xff]  ;;  %v274_v2 = vld [vmem:[#allocation7 + $0x1c8] sm:$0xff]  ;;  %v98_v5 = vunpack.c.l.bf16 %v4863_v0  ;;  %v4117_v12 = vcombine.low %v266_v48, %v270_v49  ;;  %v111_v29 = vmul.f32 %v110_v15, %v108_v11 }
  0x53   :  { %v4860_v62 = vld [vmem:[#allocation6 + $0x10] sm:$0xff]  ;;  %v278_v3 = vld [vmem:[#allocation7 + $0x1e8] sm:$0xff]  ;;  %v4124_v13 = vcombine.high %v4846_v51, %v4848_v54  ;;  %v4123_v27 = vcombine.low %v4846_v51, %v4848_v54  ;;  %v150_v54 = vstv %s4886_s16  ;;  %v4918_v10 = vshrl.u32 %v171_v46, 7 }
  0x54   :  { %3338 = vmatpush1.bf16.msra.mxu0 %v4091_v34  ;;  %3502 = vmatpush1.bf16.msra.mxu1 %v4093_v35  ;;  %v88_v4 = vunpack.c.l.bf16 %v4860_v62  ;;  %v4884_v16 = vld [vmem:[#allocation6 + $0x30] sm:$0xff]  ;;  %v4126_v17 = vcombine.high %v274_v2, %v278_v3  ;;  %v101_v21 = vmul.f32 %v100_v6, %v98_v5  ;;  %v282_v23 = vld [vmem:[#allocation7 + $0x208] sm:$0xff]  ;;  %v4125_v31 = vcombine.low %v274_v2, %v278_v3  ;;  %v4902_v34 = vld [vmem:[#allocation6 + $0x40] sm:$0xff] }
  0x55   :  { %3339 = vmatprep.subr.bf16.mxu0 %v4100_v36  ;;  %3503 = vmatprep.subr.bf16.mxu1 %v4102_v37  ;;  %v281_v18 = vld [vmem:[#allocation7 + $0x200] sm:$0xff]  ;;  %v286_v24 = vld [vmem:[#allocation7 + $0x228] sm:$0xff]  ;;  %v128_v30 = vunpack.c.l.bf16 %v4884_v16  ;;  %v148_v49 = vunpack.c.l.bf16 %v4902_v34 }
  0x56   :  { %v91_v14 = vmul.f32 %v90_v63, %v88_v4  ;;  %v285_v19 = vld [vmem:[#allocation7 + $0x220] sm:$0xff]  ;;  %v4892_v26 = vld [vmem:[#allocation6 + $0x38] sm:$0xff]  ;;  %v4134_v35 = vcombine.high %v282_v23, %v286_v24 }
  0x57   :  { %v4132_v32 = vcombine.high %v281_v18, %v285_v19  ;;  %v289_v36 = vld [vmem:[#allocation7 + $0x240] sm:$0xff]  ;;  %v138_v40 = vunpack.c.l.bf16 %v4892_v26  ;;  %v4131_v41 = vcombine.low %v281_v18, %v285_v19  ;;  %v131_v48 = vmul.f32 %v130_v33, %v128_v30  ;;  %v298_v5 = vld [vmem:[#allocation7 + $0x288] sm:$0xff] }
  0x58   :  { %3340 = vmatpush1.bf16.msra.mxu0 %v4099_v42  ;;  %3504 = vmatpush1.bf16.msra.mxu1 %v4101_v43  ;;  %v93_v28 = vadd.f32 %v91_v14, %v83_v20  ;;  %v293_v37 = vld [vmem:[#allocation7 + $0x260] sm:$0xff]  ;;  %v290_v42 = vld [vmem:[#allocation7 + $0x248] sm:$0xff] }
  0x59   :  { %3341 = vmatprep.subr.bf16.mxu0 %v4108_v44  ;;  %3505 = vmatprep.subr.bf16.mxu1 %v4110_v45  ;;  %v294_v43 = vld [vmem:[#allocation7 + $0x268] sm:$0xff]  ;;  %v140_v44 = vstv %s4872_s15  ;;  %v4908_v45 = vld [vmem:[#allocation6 + $0x48] sm:$0xff]  ;;  %v297_v60 = vld [vmem:[#allocation7 + $0x280] sm:$0xff]  ;;  %v4139_v11 = vcombine.low %v289_v36, %v293_v37 }
  0x5a   :  { %v103_v38 = vadd.f32 %v101_v21, %v93_v28  ;;  %v301_v61 = vld [vmem:[#allocation7 + $0x2a0] sm:$0xff]  ;;  %v141_v3 = vmul.f32 %v140_v44, %v138_v40  ;;  %v158_v4 = vunpack.c.l.bf16 %v4908_v45  ;;  %v318_v40 = vld [vmem:[#allocation7 + $0x328] sm:$0xff] }
  0x5b   :  { %v4148_v18 = vcombine.high %v297_v60, %v301_v61  ;;  %v305_v20 = vld [vmem:[#allocation7 + $0x2c0] sm:$0xff]  ;;  %v4147_v28 = vcombine.low %v297_v60, %v301_v61 }
  0x5c   :  { %3342 = vmatpush1.bf16.msra.mxu0 %v4107_v50  ;;  %3506 = vmatpush1.bf16.msra.mxu1 %v4109_v52  ;;  %v113_v47 = vadd.f32 %v111_v29, %v103_v38  ;;  %v4759_v50 = vmov 1983009808   ;;  %v4133_v52 = vcombine.low %v282_v23, %v286_v24  ;;  %v309_v21 = vld [vmem:[#allocation7 + $0x2e0] sm:$0xff]  ;;  %v161_v23 = vmul.f32 %v160_v9, %v158_v4  ;;  %v306_v24 = vld [vmem:[#allocation7 + $0x2c8] sm:$0xff] }
  0x5d   :  { %3343 = vmatprep.subr.bf16.mxu0 %v4116_v53  ;;  %3507 = vmatprep.subr.bf16.mxu1 %v4118_v59  ;;  %v169_v51 = vunpack.c.l.s4 %v4759_v50  ;;  %v4140_v53 = vcombine.high %v289_v36, %v293_v37  ;;  %v4142_v59 = vcombine.high %v290_v42, %v294_v43  ;;  %v313_v36 = vld [vmem:[#allocation7 + $0x300] sm:$0xff] }
  0x5e   :  { %v123_v2 = vadd.f32 %v121_v39, %v113_v47  ;;  %v317_v37 = vld [vmem:[#allocation7 + $0x320] sm:$0xff]  ;;  %v314_v39 = vld [vmem:[#allocation7 + $0x308] sm:$0xff] }
  0x5f   :  { %v170_v14 = vunpack.c.0.s8 %v169_v51  ;;  %v4164_v46 = vcombine.high %v313_v36, %v317_v37  ;;  %v4166_v47 = vcombine.high %v314_v39, %v318_v40  ;;  %v322_v51 = vld [vmem:[#allocation7 + $0x348] sm:$0xff]  ;;  %v4165_v60 = vcombine.low %v314_v39, %v318_v40  ;;  %v333_v4 = vld [vmem:[#allocation7 + $0x3a0] sm:$0xff] }
  0x60   :  { %3344 = vmatpush1.bf16.msra.mxu0 %v4115_v8  ;;  %3508 = vmatpush1.bf16.msra.mxu1 %v4117_v12  ;;  %v302_v8 = vld [vmem:[#allocation7 + $0x2a8] sm:$0xff]  ;;  %v133_v12 = vadd.f32 %v131_v48, %v123_v2  ;;  %v321_v48 = vld [vmem:[#allocation7 + $0x340] sm:$0xff] }
  0x61   :  { %3345 = vmatprep.subr.bf16.mxu0 %v4124_v13  ;;  %3509 = vmatprep.subr.bf16.mxu1 %v4126_v17  ;;  %v151_v13 = vmul.f32 %v150_v54, %v148_v49  ;;  %v4141_v17 = vcombine.low %v290_v42, %v294_v43  ;;  %v4150_v19 = vcombine.high %v298_v5, %v302_v8  ;;  %v325_v49 = vld [vmem:[#allocation7 + $0x360] sm:$0xff] }
  0x62   :  { %v143_v22 = vadd.f32 %v141_v3, %v133_v12  ;;  %v4925_v30 = vsub.s32 %v170_v14, %v4918_v10  ;;  %v4172_v61 = vcombine.high %v321_v48, %v325_v49  ;;  %v329_v3 = vld [vmem:[#allocation7 + $0x380] sm:$0xff] }
  0x64   :  { %3346 = vmatpush1.bf16.msra.mxu0 %v4123_v27  ;;  %3510 = vmatpush1.bf16.msra.mxu1 %v4125_v31  ;;  %v310_v27 = vld [vmem:[#allocation7 + $0x2e8] sm:$0xff]  ;;  %v153_v29 = vadd.f32 %v151_v13, %v143_v22  ;;  %v4149_v31 = vcombine.low %v298_v5, %v302_v8  ;;  %v4180_v13 = vcombine.high %v329_v3, %v333_v4 }
  0x65   :  { %3347 = vmatprep.subr.bf16.mxu0 %v4132_v32  ;;  %3511 = vmatprep.subr.bf16.mxu1 %v4134_v35  ;;  %v4156_v32 = vcombine.high %v305_v20, %v309_v21  ;;  %v4158_v35 = vcombine.high %v306_v24, %v310_v27  ;;  %v4157_v43 = vcombine.low %v306_v24, %v310_v27  ;;  %v330_v5 = vld [vmem:[#allocation7 + $0x388] sm:$0xff]  ;;  %v71_v27 = vunpack.c.h.bf16 %v4850_v55 }
  0x66   :  { %v163_v38 = vadd.f32 %v161_v23, %v153_v29  ;;  %v334_v8 = vld [vmem:[#allocation7 + $0x3a8] sm:$0xff]  ;;  %v4179_v22 = vcombine.low %v329_v3, %v333_v4  ;;  %v345_v29 = vld [vmem:[#allocation7 + $0x400] sm:$0xff]  ;;  %v119_v4 = vunpack.c.h.bf16 %v4870_v7 }
  0x67   :  { %v4182_v14 = vcombine.high %v330_v5, %v334_v8  ;;  %v4181_v23 = vcombine.low %v330_v5, %v334_v8  ;;  %v139_v5 = vunpack.c.h.bf16 %v4892_v26  ;;  %v362_v8 = vld [vmem:[#allocation7 + $0x488] sm:$0xff]  ;;  %v149_v26 = vunpack.c.h.bf16 %v4902_v34 }
  0x68   :  { %3348 = vmatpush1.bf16.msra.mxu0 %v4131_v41  ;;  %3512 = vmatpush1.bf16.msra.mxu1 %v4133_v52  ;;  %v4155_v41 = vcombine.low %v305_v20, %v309_v21  ;;  %v4928_v42 = vrot.slane %v163_v38, %v4925_v30  ;;  %v326_v52 = vld [vmem:[#allocation7 + $0x368] sm:$0xff] }
  0x69   :  { %3349 = vmatprep.subr.bf16.mxu0 %v4140_v53  ;;  %3513 = vmatprep.subr.bf16.mxu1 %v4142_v59  ;;  %v4163_v53 = vcombine.low %v313_v36, %v317_v37  ;;  %v4174_v2 = vcombine.high %v322_v51, %v326_v52  ;;  %v4173_v12 = vcombine.low %v322_v51, %v326_v52  ;;  %v338_v20 = vld [vmem:[#allocation7 + $0x3c8] sm:$0xff]  ;;  %v79_v37 = vunpack.c.h.bf16 %v4853_v57 }
  0x6a   :  { %v182_v50 = vcombine.high %v4928_v42, %v4928_v42  ;;  %v342_v21 = vld [vmem:[#allocation7 + $0x3e8] sm:$0xff]  ;;  %v4948_v57 = vpack.c.bf16 %v4928_v42, %v4928_v42  ;;  %v99_v52 = vunpack.c.h.bf16 %v4863_v0  ;;  %v365_v42 = vld [vmem:[#allocation7 + $0x4a0] sm:$0xff]  ;;  %v152_v34 = vmul.f32 %v150_v54, %v149_v26 }
  0x6b   :  { %v350_v36 = vld [vmem:[#allocation7 + $0x428] sm:$0xff]  ;;  %v4189_v55 = vcombine.low %v338_v20, %v342_v21 }
  0x6c   :  { %3350 = vmatpush1.bf16.msra.mxu0 %v4139_v11  ;;  %3514 = vmatpush1.bf16.msra.mxu1 %v4141_v17  ;;  %v4932_v59 = vpack.c.bf16 %v182_v50, %v182_v50  ;;  %v4171_v11 = vcombine.low %v321_v48, %v325_v49  ;;  %v337_v17 = vld [vmem:[#allocation7 + $0x3c0] sm:$0xff]  ;;  %v358_v49 = vld [vmem:[#allocation7 + $0x468] sm:$0xff]  ;;  %v82_v50 = vmul.f32 %v80_v58, %v79_v37  ;;  %v129_v58 = vunpack.c.h.bf16 %v4884_v16 }
  0x6d   :  { %3351 = vmatprep.subr.bf16.mxu0 %v4148_v18  ;;  %3515 = vmatprep.subr.bf16.mxu1 %v4150_v19  ;;  %v341_v18 = vld [vmem:[#allocation7 + $0x3e0] sm:$0xff]  ;;  %v167_v19 = vcombine.high %v163_v38, %v163_v38  ;;  %v89_v38 = vunpack.c.h.bf16 %v4860_v62  ;;  %v354_v62 = vld [vmem:[#allocation7 + $0x448] sm:$0xff] }
  0x6e   :  { %3363 = vmatprep.mubr.bf16.mxu0 %v4932_v59  ;;  %3527 = vmatprep.mubr.bf16.mxu1 %v4932_v59  ;;  %v4188_v24 = vcombine.high %v337_v17, %v341_v18  ;;  %v4187_v39 = vcombine.low %v337_v17, %v341_v18  ;;  %v4205_v7 = vcombine.low %v354_v62, %v358_v49  ;;  %v382_v54 = vld [vmem:[#allocation7 + $0x528] sm:$0xff] }
  0x6f   :  { %v92_v51 = vmul.f32 %v90_v63, %v89_v38  ;;  %v4206_v63 = vcombine.high %v354_v62, %v358_v49  ;;  %v122_v18 = vmul.f32 %v120_v25, %v119_v4  ;;  %v414_v26 = vld [vmem:[#allocation7 + $0x628] sm:$0xff] }
  0x70   :  { %3352 = vmatpush1.bf16.msra.mxu0 %v4147_v28  ;;  %3516 = vmatpush1.bf16.msra.mxu1 %v4149_v31  ;;  %v4190_v28 = vcombine.high %v338_v20, %v342_v21  ;;  %v349_v31 = vld [vmem:[#allocation7 + $0x420] sm:$0xff] }
  0x71   :  { %3353 = vmatprep.subr.bf16.mxu0 %v4156_v32  ;;  %3517 = vmatprep.subr.bf16.mxu1 %v4158_v35  ;;  %v4938_v32 = vrot.slane %v167_v19, %v4925_v30  ;;  %v346_v35 = vld [vmem:[#allocation7 + $0x408] sm:$0xff]  ;;  %v4196_v40 = vcombine.high %v345_v29, %v349_v31  ;;  %v132_v19 = vmul.f32 %v130_v33, %v129_v58  ;;  %v369_v21 = vld [vmem:[#allocation7 + $0x4c0] sm:$0xff] }
  0x72   :  { %v401_v58 = vld [vmem:[#allocation7 + $0x5c0] sm:$0xff] }
  0x73   :  { %v183_v48 = vcombine.high %v4938_v32, %v4938_v32 }
  0x74   :  { %3354 = vmatpush1.bf16.msra.mxu0 %v4155_v41  ;;  %3518 = vmatpush1.bf16.msra.mxu1 %v4157_v43  ;;  %v74_v41 = vmul.f32 %v72_v56, %v71_v27  ;;  %v4198_v43 = vcombine.high %v346_v35, %v350_v36  ;;  %v4195_v56 = vcombine.low %v345_v29, %v349_v31 }
  0x75   :  { %3355 = vmatprep.subr.bf16.mxu0 %v4164_v46  ;;  %3519 = vmatprep.subr.bf16.mxu1 %v4166_v47  ;;  %v353_v46 = vld [vmem:[#allocation7 + $0x440] sm:$0xff]  ;;  %v4958_v0 = vpack.c.bf16 %v183_v48, %v183_v48 }
  0x76   :  { %v357_v47 = vld [vmem:[#allocation7 + $0x460] sm:$0xff]  ;;  %v84_v3 = vadd.f32 %v82_v50, %v74_v41 }
  0x77   :  { %v385_v41 = vld [vmem:[#allocation7 + $0x540] sm:$0xff] }
  0x78   :  { %3356 = vmatpush1.bf16.msra.mxu0 %v4163_v53  ;;  %3520 = vmatpush1.bf16.msra.mxu1 %v4165_v60  ;;  %v4197_v53 = vcombine.low %v346_v35, %v350_v36  ;;  %v109_v60 = vunpack.c.h.bf16 %v4865_v1  ;;  %v4203_v1 = vcombine.low %v353_v46, %v357_v47  ;;  %v377_v35 = vld [vmem:[#allocation7 + $0x500] sm:$0xff]  ;;  %v378_v36 = vld [vmem:[#allocation7 + $0x508] sm:$0xff] }
  0x79   :  { %3357 = vmatprep.subr.bf16.mxu0 %v4172_v61  ;;  %3521 = vmatprep.subr.bf16.mxu1 %v4174_v2  ;;  %v4204_v61 = vcombine.high %v353_v46, %v357_v47  ;;  %v361_v2 = vld [vmem:[#allocation7 + $0x480] sm:$0xff]  ;;  %v386_v46 = vld [vmem:[#allocation7 + $0x548] sm:$0xff]  ;;  %v4229_v49 = vcombine.low %v378_v36, %v382_v54 }
  0x7a   :  { %v4212_v16 = vcombine.high %v361_v2, %v365_v42  ;;  %v4211_v33 = vcombine.low %v361_v2, %v365_v42  ;;  %v390_v47 = vld [vmem:[#allocation7 + $0x568] sm:$0xff] }
  0x7b   :  { %v4237_v42 = vcombine.low %v386_v46, %v390_v47 }
  0x7c   :  { %3358 = vmatpush1.bf16.msra.mxu0 %v4171_v11  ;;  %3522 = vmatpush1.bf16.msra.mxu1 %v4173_v12  ;;  %v366_v11 = vld [vmem:[#allocation7 + $0x4a8] sm:$0xff]  ;;  %v94_v12 = vadd.f32 %v92_v51, %v84_v3 }
  0x7d   :  { %3359 = vmatprep.subr.bf16.mxu0 %v4180_v13  ;;  %3523 = vmatprep.subr.bf16.mxu1 %v4182_v14  ;;  %v102_v13 = vmul.f32 %v100_v6, %v99_v52  ;;  %v112_v14 = vmul.f32 %v110_v15, %v109_v60  ;;  %v159_v6 = vunpack.c.h.bf16 %v4908_v45  ;;  %v4214_v20 = vcombine.high %v362_v8, %v366_v11  ;;  %v394_v60 = vld [vmem:[#allocation7 + $0x588] sm:$0xff] }
  0x7e   :  { %v142_v15 = vmul.f32 %v140_v44, %v139_v5  ;;  %v4213_v45 = vcombine.low %v362_v8, %v366_v11  ;;  %v381_v44 = vld [vmem:[#allocation7 + $0x520] sm:$0xff]  ;;  %v4238_v52 = vcombine.high %v386_v46, %v390_v47  ;;  %v402_v5 = vld [vmem:[#allocation7 + $0x5c8] sm:$0xff] }
  0x7f   :  { %v104_v17 = vadd.f32 %v102_v13, %v94_v12  ;;  %v162_v25 = vmul.f32 %v160_v9, %v159_v6  ;;  %v4228_v9 = vcombine.high %v377_v35, %v381_v44  ;;  %v4227_v62 = vcombine.low %v377_v35, %v381_v44  ;;  %v442_v46 = vld [vmem:[#allocation7 + $0x708] sm:$0xff] }
  0x80   :  { %3360 = vmatpush1.bf16.msra.mxu0 %v4179_v22  ;;  %3524 = vmatpush1.bf16.msra.mxu1 %v4181_v23  ;;  %v373_v22 = vld [vmem:[#allocation7 + $0x4e0] sm:$0xff]  ;;  %v370_v23 = vld [vmem:[#allocation7 + $0x4c8] sm:$0xff] }
  0x81   :  { %3361 = vmatprep.subr.bf16.mxu0 %v4188_v24  ;;  %3525 = vmatprep.subr.bf16.mxu1 %v4190_v28  ;;  %v374_v24 = vld [vmem:[#allocation7 + $0x4e8] sm:$0xff]  ;;  %v114_v27 = vadd.f32 %v112_v14, %v104_v17  ;;  %v4220_v28 = vcombine.high %v369_v21, %v373_v22  ;;  %v4219_v38 = vcombine.low %v369_v21, %v373_v22  ;;  %v421_v21 = vld [vmem:[#allocation7 + $0x660] sm:$0xff] }
  0x82   :  { %v4222_v31 = vcombine.high %v370_v23, %v374_v24  ;;  %v410_v14 = vld [vmem:[#allocation7 + $0x608] sm:$0xff] }
  0x83   :  { %v124_v29 = vadd.f32 %v122_v18, %v114_v27  ;;  %v4262_v6 = vcombine.high %v410_v14, %v414_v26  ;;  %v418_v22 = vld [vmem:[#allocation7 + $0x648] sm:$0xff] }
  0x84   :  { %3362 = vmatpush1.bf16.msra.mxu0 %v4187_v39  ;;  %3526 = vmatpush1.bf16.msra.mxu1 %v4189_v55  ;;  %v4221_v39 = vcombine.low %v370_v23, %v374_v24  ;;  %v4261_v23 = vcombine.low %v410_v14, %v414_v26  ;;  %v446_v47 = vld [vmem:[#allocation7 + $0x728] sm:$0xff] }
  0x85   :  { %3372 = vmatprep.subr.bf16.mxu0 %v4196_v40  ;;  %3536 = vmatprep.subr.bf16.mxu1 %v4198_v43  ;;  %v134_v37 = vadd.f32 %v132_v19, %v124_v29  ;;  %v4230_v40 = vcombine.high %v378_v36, %v382_v54  ;;  %v389_v43 = vld [vmem:[#allocation7 + $0x560] sm:$0xff]  ;;  %v470_v14 = vld [vmem:[#allocation7 + $0x7e8] sm:$0xff] }
  0x86   :  { %v4236_v50 = vcombine.high %v385_v41, %v389_v43  ;;  %v4235_v2 = vcombine.low %v385_v41, %v389_v43  ;;  %v433_v36 = vld [vmem:[#allocation7 + $0x6c0] sm:$0xff] }
  0x87   :  { %3364 = vmatmul.mubr.bf16.vlgmr.msra.gmra.mrb[0].mxu0 %v4948_v57  ;;  %3528 = vmatmul.mubr.bf16.vlgmr.msra.gmra.mrb[0].mxu1 %v4948_v57  ;;  %v144_v55 = vadd.f32 %v142_v15, %v134_v37  ;;  %v422_v15 = vld [vmem:[#allocation7 + $0x668] sm:$0xff]  ;;  %v437_v54 = vld [vmem:[#allocation7 + $0x6e0] sm:$0xff] }
  0x88   :  { %3373 = vmatpush1.bf16.msra.mxu0 %v4195_v56  ;;  %3537 = vmatpush1.bf16.msra.mxu1 %v4197_v53  ;;  %v393_v56 = vld [vmem:[#allocation7 + $0x580] sm:$0xff]  ;;  %v4270_v27 = vcombine.high %v418_v22, %v422_v15  ;;  %v434_v37 = vld [vmem:[#allocation7 + $0x6c8] sm:$0xff] }
  0x89   :  { %3374 = vmatprep.subr.bf16.mxu0 %v4204_v61  ;;  %3538 = vmatprep.subr.bf16.mxu1 %v4206_v63  ;;  %v154_v48 = vadd.f32 %v152_v34, %v144_v55  ;;  %v397_v53 = vld [vmem:[#allocation7 + $0x5a0] sm:$0xff]  ;;  %v398_v61 = vld [vmem:[#allocation7 + $0x5a8] sm:$0xff]  ;;  %v4284_v55 = vcombine.high %v433_v36, %v437_v54 }
  0x8a   :  { %3404 = vmatprep.mubr.bf16.mxu0 %v4958_v0  ;;  %3568 = vmatprep.mubr.bf16.mxu1 %v4958_v0  ;;  %v4244_v3 = vcombine.high %v393_v56, %v397_v53  ;;  %v4246_v4 = vcombine.high %v394_v60, %v398_v61  ;;  %v405_v63 = vld [vmem:[#allocation7 + $0x5e0] sm:$0xff]  ;;  %v4243_v8 = vcombine.low %v393_v56, %v397_v53  ;;  %v450_v53 = vld [vmem:[#allocation7 + $0x748] sm:$0xff] }
  0x8b   :  { %v4981_v51 = vadd.f32 %v162_v25, %v154_v48  ;;  %v4245_v11 = vcombine.low %v394_v60, %v398_v61  ;;  %v4252_v12 = vcombine.high %v401_v58, %v405_v63  ;;  %v4251_v17 = vcombine.low %v401_v58, %v405_v63  ;;  %v425_v25 = vld [vmem:[#allocation7 + $0x680] sm:$0xff]  ;;  %v454_v60 = vld [vmem:[#allocation7 + $0x768] sm:$0xff] }
  0x8c   :  { %3375 = vmatpush1.bf16.msra.mxu0 %v4203_v1  ;;  %3539 = vmatpush1.bf16.msra.mxu1 %v4205_v7  ;;  %v406_v1 = vld [vmem:[#allocation7 + $0x5e8] sm:$0xff]  ;;  %v409_v7 = vld [vmem:[#allocation7 + $0x600] sm:$0xff]  ;;  %v4283_v48 = vcombine.low %v433_v36, %v437_v54 }
  0x8d   :  { %3376 = vmatprep.subr.bf16.mxu0 %v4212_v16  ;;  %3540 = vmatprep.subr.bf16.mxu1 %v4214_v20  ;;  %v4254_v13 = vcombine.high %v402_v5, %v406_v1  ;;  %v413_v16 = vld [vmem:[#allocation7 + $0x620] sm:$0xff]  ;;  %v4253_v18 = vcombine.low %v402_v5, %v406_v1  ;;  %v458_v63 = vld [vmem:[#allocation7 + $0x788] sm:$0xff] }
  0x8e   :  { %v4260_v19 = vcombine.high %v409_v7, %v413_v16  ;;  %v417_v20 = vld [vmem:[#allocation7 + $0x640] sm:$0xff]  ;;  %v4259_v34 = vcombine.low %v409_v7, %v413_v16  ;;  %v462_v5 = vld [vmem:[#allocation7 + $0x7a8] sm:$0xff] }
  0x8f   :  { %v4268_v24 = vcombine.high %v417_v20, %v421_v21  ;;  %v4267_v29 = vcombine.low %v417_v20, %v421_v21  ;;  %v441_v41 = vld [vmem:[#allocation7 + $0x700] sm:$0xff]  ;;  %v466_v16 = vld [vmem:[#allocation7 + $0x7c8] sm:$0xff]  ;;  %v4985_v21 = vrot.slane %v4981_v51, %v4925_v30 }
  0x90   :  { %3377 = vmatpush1.bf16.msra.mxu0 %v4211_v33  ;;  %3541 = vmatpush1.bf16.msra.mxu1 %v4213_v45  ;;  %v429_v33 = vld [vmem:[#allocation7 + $0x6a0] sm:$0xff]  ;;  %v426_v45 = vld [vmem:[#allocation7 + $0x688] sm:$0xff] }
  0x91   :  { %3378 = vmatprep.subr.bf16.mxu0 %v4220_v28  ;;  %3542 = vmatprep.subr.bf16.mxu1 %v4222_v31  ;;  %v430_v28 = vld [vmem:[#allocation7 + $0x6a8] sm:$0xff]  ;;  %v4269_v31 = vcombine.low %v418_v22, %v422_v15  ;;  %v4276_v35 = vcombine.high %v425_v25, %v429_v33  ;;  %v445_v43 = vld [vmem:[#allocation7 + $0x720] sm:$0xff] }
  0x92   :  { %v4278_v44 = vcombine.high %v426_v45, %v430_v28  ;;  %v453_v56 = vld [vmem:[#allocation7 + $0x760] sm:$0xff]  ;;  %v4291_v61 = vcombine.low %v441_v41, %v445_v43  ;;  %v474_v22 = vld [vmem:[#allocation7 + $0x808] sm:$0xff] }
  0x93   :  { %v461_v58 = vld [vmem:[#allocation7 + $0x7a0] sm:$0xff]  ;;  %v478_v15 = vld [vmem:[#allocation7 + $0x828] sm:$0xff] }
  0x94   :  { %3379 = vmatpush1.bf16.msra.mxu0 %v4219_v38  ;;  %3543 = vmatpush1.bf16.msra.mxu1 %v4221_v39  ;;  %v438_v38 = vld [vmem:[#allocation7 + $0x6e8] sm:$0xff]  ;;  %v4275_v39 = vcombine.low %v425_v25, %v429_v33  ;;  %v469_v7 = vld [vmem:[#allocation7 + $0x7e0] sm:$0xff] }
  0x95   :  { %3380 = vmatprep.subr.bf16.mxu0 %v4228_v9  ;;  %3544 = vmatprep.subr.bf16.mxu1 %v4230_v40  ;;  %v4277_v9 = vcombine.low %v426_v45, %v430_v28  ;;  %v4286_v40 = vcombine.high %v434_v37, %v438_v38  ;;  %v477_v20 = vld [vmem:[#allocation7 + $0x820] sm:$0xff]  ;;  %v199_v45 = vcombine.high %v4985_v21, %v4985_v21 }
  0x96   :  { %v481_v25 = vld [vmem:[#allocation7 + $0x840] sm:$0xff]  ;;  %v4991_v28 = vpack.c.bf16 %v4938_v32, %v4938_v32 }
  0x97   :  { %v485_v33 = vld [vmem:[#allocation7 + $0x860] sm:$0xff] }
  0x98   :  { %3381 = vmatpush1.bf16.msra.mxu0 %v4227_v62  ;;  %3545 = vmatpush1.bf16.msra.mxu1 %v4229_v49  ;;  %v4285_v62 = vcombine.low %v434_v37, %v438_v38  ;;  %v4292_v49 = vcombine.high %v441_v41, %v445_v43  ;;  %v4332_v36 = vcombine.high %v481_v25, %v485_v33  ;;  %v489_v37 = vld [vmem:[#allocation7 + $0x880] sm:$0xff] }
  0x99   :  { %3382 = vmatprep.subr.bf16.mxu0 %v4236_v50  ;;  %3546 = vmatprep.subr.bf16.mxu1 %v4238_v52  ;;  %v4294_v50 = vcombine.high %v442_v46, %v446_v47  ;;  %v449_v52 = vld [vmem:[#allocation7 + $0x740] sm:$0xff]  ;;  %v4331_v32 = vcombine.low %v481_v25, %v485_v33 }
  0x9a   :  { %v4299_v1 = vcombine.low %v449_v52, %v453_v56  ;;  %v493_v38 = vld [vmem:[#allocation7 + $0x8a0] sm:$0xff] }
  0x9b   :  { %v4340_v41 = vcombine.high %v489_v37, %v493_v38 }
  0x9c   :  { %3383 = vmatpush1.bf16.msra.mxu0 %v4235_v2  ;;  %3547 = vmatpush1.bf16.msra.mxu1 %v4237_v42  ;;  %v4293_v2 = vcombine.low %v442_v46, %v446_v47  ;;  %v4300_v42 = vcombine.high %v449_v52, %v453_v56  ;;  %v497_v46 = vld [vmem:[#allocation7 + $0x8c0] sm:$0xff] }
  0x9d   :  { %3384 = vmatprep.subr.bf16.mxu0 %v4244_v3  ;;  %3548 = vmatprep.subr.bf16.mxu1 %v4246_v4  ;;  %v4302_v3 = vcombine.high %v450_v53, %v454_v60  ;;  %v457_v4 = vld [vmem:[#allocation7 + $0x780] sm:$0xff] }
  0x9e   :  { %v4307_v26 = vcombine.low %v457_v4, %v461_v58  ;;  %v501_v47 = vld [vmem:[#allocation7 + $0x8e0] sm:$0xff] }
  0x9f   :  { %v4348_v52 = vcombine.high %v497_v46, %v501_v47 }
  0xa0   :  { %3385 = vmatpush1.bf16.msra.mxu0 %v4243_v8  ;;  %3549 = vmatpush1.bf16.msra.mxu1 %v4245_v11  ;;  %v4301_v8 = vcombine.low %v450_v53, %v454_v60  ;;  %v4308_v11 = vcombine.high %v457_v4, %v461_v58  ;;  %v505_v53 = vld [vmem:[#allocation7 + $0x900] sm:$0xff] }
  0xa1   :  { %3386 = vmatprep.subr.bf16.mxu0 %v4252_v12  ;;  %3550 = vmatprep.subr.bf16.mxu1 %v4254_v13  ;;  %v4310_v12 = vcombine.high %v458_v63, %v462_v5  ;;  %v465_v13 = vld [vmem:[#allocation7 + $0x7c0] sm:$0xff] }
  0xa2   :  { %v509_v60 = vld [vmem:[#allocation7 + $0x920] sm:$0xff] }
  0xa3   :  { %v4356_v4 = vcombine.high %v505_v53, %v509_v60 }
  0xa4   :  { %3387 = vmatpush1.bf16.msra.mxu0 %v4251_v17  ;;  %3551 = vmatpush1.bf16.msra.mxu1 %v4253_v18  ;;  %v4309_v17 = vcombine.low %v458_v63, %v462_v5  ;;  %v4316_v18 = vcombine.high %v465_v13, %v469_v7  ;;  %v513_v63 = vld [vmem:[#allocation7 + $0x940] sm:$0xff] }
  0xa5   :  { %3388 = vmatprep.subr.bf16.mxu0 %v4260_v19  ;;  %3552 = vmatprep.subr.bf16.mxu1 %v4262_v6  ;;  %v4318_v19 = vcombine.high %v466_v16, %v470_v14  ;;  %v473_v6 = vld [vmem:[#allocation7 + $0x800] sm:$0xff] }
  0xa6   :  { %v517_v5 = vld [vmem:[#allocation7 + $0x960] sm:$0xff] }
  0xa8   :  { %3389 = vmatpush1.bf16.msra.mxu0 %v4259_v34  ;;  %3553 = vmatpush1.bf16.msra.mxu1 %v4261_v23  ;;  %v4315_v34 = vcombine.low %v465_v13, %v469_v7  ;;  %v4317_v23 = vcombine.low %v466_v16, %v470_v14  ;;  %v4364_v13 = vcombine.high %v513_v63, %v517_v5  ;;  %v521_v16 = vld [vmem:[#allocation7 + $0x980] sm:$0xff] }
  0xa9   :  { %3390 = vmatprep.subr.bf16.mxu0 %v4268_v24  ;;  %3554 = vmatprep.subr.bf16.mxu1 %v4270_v27  ;;  %v4324_v24 = vcombine.high %v473_v6, %v477_v20  ;;  %v4326_v27 = vcombine.high %v474_v22, %v478_v15  ;;  %v525_v14 = vld [vmem:[#allocation7 + $0x9a0] sm:$0xff] }
  0xac   :  { %3391 = vmatpush1.bf16.msra.mxu0 %v4267_v29  ;;  %3555 = vmatpush1.bf16.msra.mxu1 %v4269_v31  ;;  %v482_v29 = vld [vmem:[#allocation7 + $0x848] sm:$0xff] }
  0xad   :  { %3392 = vmatprep.subr.bf16.mxu0 %v4276_v35  ;;  %3556 = vmatprep.subr.bf16.mxu1 %v4278_v44  ;;  %v486_v31 = vld [vmem:[#allocation7 + $0x868] sm:$0xff]  ;;  %v4323_v35 = vcombine.low %v473_v6, %v477_v20  ;;  %v4325_v44 = vcombine.low %v474_v22, %v478_v15  ;;  %v4372_v6 = vcombine.high %v521_v16, %v525_v14  ;;  %v529_v22 = vld [vmem:[#allocation7 + $0x9c0] sm:$0xff] }
  0xae   :  { %v4334_v54 = vcombine.high %v482_v29, %v486_v31  ;;  %v533_v15 = vld [vmem:[#allocation7 + $0x9e0] sm:$0xff] }
  0xaf   :  { %v4380_v25 = vcombine.high %v529_v22, %v533_v15 }
  0xb0   :  { %3393 = vmatpush1.bf16.msra.mxu0 %v4275_v39  ;;  %3557 = vmatpush1.bf16.msra.mxu1 %v4277_v9  ;;  %v4993_v39 = vpack.c.bf16 %v199_v45, %v199_v45  ;;  %v490_v9 = vld [vmem:[#allocation7 + $0x888] sm:$0xff]  ;;  %v537_v45 = vld [vmem:[#allocation7 + $0xa00] sm:$0xff] }
  0xb1   :  { %3394 = vmatprep.subr.bf16.mxu0 %v4284_v55  ;;  %3558 = vmatprep.subr.bf16.mxu1 %v4286_v40  ;;  %v494_v55 = vld [vmem:[#allocation7 + $0x8a8] sm:$0xff]  ;;  %v4333_v40 = vcombine.low %v482_v29, %v486_v31  ;;  %v541_v29 = vld [vmem:[#allocation7 + $0xa20] sm:$0xff] }
  0xb2   :  { %v4342_v43 = vcombine.high %v490_v9, %v494_v55  ;;  %v538_v31 = vld [vmem:[#allocation7 + $0xa08] sm:$0xff] }
  0xb4   :  { %3395 = vmatpush1.bf16.msra.mxu0 %v4283_v48  ;;  %3559 = vmatpush1.bf16.msra.mxu1 %v4285_v62  ;;  %v498_v48 = vld [vmem:[#allocation7 + $0x8c8] sm:$0xff] }
  0xb5   :  { %3396 = vmatprep.subr.bf16.mxu0 %v4292_v49  ;;  %3560 = vmatprep.subr.bf16.mxu1 %v4294_v50  ;;  %v502_v62 = vld [vmem:[#allocation7 + $0x8e8] sm:$0xff]  ;;  %v4339_v49 = vcombine.low %v489_v37, %v493_v38  ;;  %v4341_v50 = vcombine.low %v490_v9, %v494_v55  ;;  %v545_v38 = vld [vmem:[#allocation7 + $0xa40] sm:$0xff] }
  0xb6   :  { %v4350_v56 = vcombine.high %v498_v48, %v502_v62  ;;  %v549_v9 = vld [vmem:[#allocation7 + $0xa60] sm:$0xff]  ;;  %v546_v55 = vld [vmem:[#allocation7 + $0xa48] sm:$0xff] }
  0xb8   :  { %3397 = vmatpush1.bf16.msra.mxu0 %v4291_v61  ;;  %3561 = vmatpush1.bf16.msra.mxu1 %v4293_v2  ;;  %v506_v61 = vld [vmem:[#allocation7 + $0x908] sm:$0xff] }
  0xb9   :  { %3398 = vmatprep.subr.bf16.mxu0 %v4300_v42  ;;  %3562 = vmatprep.subr.bf16.mxu1 %v4302_v3  ;;  %v510_v2 = vld [vmem:[#allocation7 + $0x928] sm:$0xff]  ;;  %v4347_v42 = vcombine.low %v497_v46, %v501_v47  ;;  %v4349_v3 = vcombine.low %v498_v48, %v502_v62  ;;  %v553_v47 = vld [vmem:[#allocation7 + $0xa80] sm:$0xff] }
  0xba   :  { %v4358_v58 = vcombine.high %v506_v61, %v510_v2  ;;  %v557_v48 = vld [vmem:[#allocation7 + $0xaa0] sm:$0xff]  ;;  %v554_v62 = vld [vmem:[#allocation7 + $0xa88] sm:$0xff] }
  0xbc   :  { %3399 = vmatpush1.bf16.msra.mxu0 %v4299_v1  ;;  %3563 = vmatpush1.bf16.msra.mxu1 %v4301_v8  ;;  %v514_v1 = vld [vmem:[#allocation7 + $0x948] sm:$0xff] }
  0xbd   :  { %3400 = vmatprep.subr.bf16.mxu0 %v4308_v11  ;;  %3564 = vmatprep.subr.bf16.mxu1 %v4310_v12  ;;  %v518_v8 = vld [vmem:[#allocation7 + $0x968] sm:$0xff]  ;;  %v4355_v11 = vcombine.low %v505_v53, %v509_v60  ;;  %v4357_v12 = vcombine.low %v506_v61, %v510_v2  ;;  %v561_v60 = vld [vmem:[#allocation7 + $0xac0] sm:$0xff] }
  0xbe   :  { %v4366_v7 = vcombine.high %v514_v1, %v518_v8  ;;  %v565_v61 = vld [vmem:[#allocation7 + $0xae0] sm:$0xff]  ;;  %v562_v2 = vld [vmem:[#allocation7 + $0xac8] sm:$0xff] }
  0xc0   :  { %3401 = vmatpush1.bf16.msra.mxu0 %v4307_v26  ;;  %3565 = vmatpush1.bf16.msra.mxu1 %v4309_v17  ;;  %v522_v26 = vld [vmem:[#allocation7 + $0x988] sm:$0xff] }
  0xc1   :  { %3402 = vmatprep.subr.bf16.mxu0 %v4316_v18  ;;  %3566 = vmatprep.subr.bf16.mxu1 %v4318_v19  ;;  %v526_v17 = vld [vmem:[#allocation7 + $0x9a8] sm:$0xff]  ;;  %v4363_v18 = vcombine.low %v513_v63, %v517_v5  ;;  %v4365_v19 = vcombine.low %v514_v1, %v518_v8  ;;  %v569_v5 = vld [vmem:[#allocation7 + $0xb00] sm:$0xff] }
  0xc2   :  { %v4374_v20 = vcombine.high %v522_v26, %v526_v17  ;;  %v573_v1 = vld [vmem:[#allocation7 + $0xb20] sm:$0xff]  ;;  %v570_v8 = vld [vmem:[#allocation7 + $0xb08] sm:$0xff] }
  0xc4   :  { %3403 = vmatpush1.bf16.msra.mxu0 %v4315_v34  ;;  %3567 = vmatpush1.bf16.msra.mxu1 %v4317_v23  ;;  %v530_v34 = vld [vmem:[#allocation7 + $0x9c8] sm:$0xff] }
  0xc5   :  { %3413 = vmatprep.subr.bf16.mxu0 %v4324_v24  ;;  %3577 = vmatprep.subr.bf16.mxu1 %v4326_v27  ;;  %v534_v23 = vld [vmem:[#allocation7 + $0x9e8] sm:$0xff]  ;;  %v4371_v24 = vcombine.low %v521_v16, %v525_v14  ;;  %v4373_v27 = vcombine.low %v522_v26, %v526_v17  ;;  %v577_v14 = vld [vmem:[#allocation7 + $0xb40] sm:$0xff] }
  0xc6   :  { %v4382_v33 = vcombine.high %v530_v34, %v534_v23  ;;  %v581_v26 = vld [vmem:[#allocation7 + $0xb60] sm:$0xff]  ;;  %v578_v17 = vld [vmem:[#allocation7 + $0xb48] sm:$0xff] }
  0xc7   :  { %3405 = vmatmul.mubr.bf16.vlgmr.msra.gmra.mrb[0].mxu0 %v4991_v28  ;;  %3569 = vmatmul.mubr.bf16.vlgmr.msra.gmra.mrb[0].mxu1 %v4991_v28 }
  0xc8   :  { %3414 = vmatpush1.bf16.msra.mxu0 %v4323_v35  ;;  %3578 = vmatpush1.bf16.msra.mxu1 %v4325_v44  ;;  %v542_v35 = vld [vmem:[#allocation7 + $0xa28] sm:$0xff]  ;;  %v4379_v44 = vcombine.low %v529_v22, %v533_v15  ;;  %v585_v15 = vld [vmem:[#allocation7 + $0xb80] sm:$0xff] }
  0xc9   :  { %3415 = vmatprep.subr.bf16.mxu0 %v4332_v36  ;;  %3579 = vmatprep.subr.bf16.mxu1 %v4334_v54  ;;  %v4381_v36 = vcombine.low %v530_v34, %v534_v23  ;;  %v4388_v54 = vcombine.high %v537_v45, %v541_v29  ;;  %v4390_v37 = vcombine.high %v538_v31, %v542_v35  ;;  %v589_v34 = vld [vmem:[#allocation7 + $0xba0] sm:$0xff]  ;;  %v586_v23 = vld [vmem:[#allocation7 + $0xb88] sm:$0xff] }
  0xca   :  { %3445 = vmatprep.mubr.bf16.mxu0 %v4993_v39  ;;  %3609 = vmatprep.mubr.bf16.mxu1 %v4993_v39 }
  0xcc   :  { %3416 = vmatpush1.bf16.msra.mxu0 %v4331_v32  ;;  %3580 = vmatpush1.bf16.msra.mxu1 %v4333_v40  ;;  %v550_v32 = vld [vmem:[#allocation7 + $0xa68] sm:$0xff]  ;;  %v4387_v40 = vcombine.low %v537_v45, %v541_v29  ;;  %v593_v29 = vld [vmem:[#allocation7 + $0xbc0] sm:$0xff] }
  0xcd   :  { %3417 = vmatprep.subr.bf16.mxu0 %v4340_v41  ;;  %3581 = vmatprep.subr.bf16.mxu1 %v4342_v43  ;;  %v4389_v41 = vcombine.low %v538_v31, %v542_v35  ;;  %v4396_v43 = vcombine.high %v545_v38, %v549_v9  ;;  %v4398_v46 = vcombine.high %v546_v55, %v550_v32  ;;  %v597_v31 = vld [vmem:[#allocation7 + $0xbe0] sm:$0xff] }
  0xce   :  { %v184_v35 = vcombine.high %v4981_v51, %v4981_v51 }
  0xd0   :  { %3418 = vmatpush1.bf16.msra.mxu0 %v4339_v49  ;;  %3582 = vmatpush1.bf16.msra.mxu1 %v4341_v50  ;;  %v558_v49 = vld [vmem:[#allocation7 + $0xaa8] sm:$0xff]  ;;  %v4395_v50 = vcombine.low %v545_v38, %v549_v9  ;;  %v4444_v38 = vcombine.high %v593_v29, %v597_v31 }
  0xd1   :  { %3419 = vmatprep.subr.bf16.mxu0 %v4348_v52  ;;  %3583 = vmatprep.subr.bf16.mxu1 %v4350_v56  ;;  %v4397_v52 = vcombine.low %v546_v55, %v550_v32  ;;  %v4404_v56 = vcombine.high %v553_v47, %v557_v48  ;;  %v4406_v53 = vcombine.high %v554_v62, %v558_v49  ;;  %v601_v55 = vld [vmem:[#allocation7 + $0xc00] sm:$0xff] }
  0xd2   :  { %v605_v32 = vld [vmem:[#allocation7 + $0xc20] sm:$0xff] }
  0xd4   :  { %3420 = vmatpush1.bf16.msra.mxu0 %v4347_v42  ;;  %3584 = vmatpush1.bf16.msra.mxu1 %v4349_v3  ;;  %v566_v42 = vld [vmem:[#allocation7 + $0xae8] sm:$0xff]  ;;  %v4403_v3 = vcombine.low %v553_v47, %v557_v48  ;;  %v4452_v47 = vcombine.high %v601_v55, %v605_v32 }
  0xd5   :  { %3421 = vmatprep.subr.bf16.mxu0 %v4356_v4  ;;  %3585 = vmatprep.subr.bf16.mxu1 %v4358_v58  ;;  %v4405_v4 = vcombine.low %v554_v62, %v558_v49  ;;  %v4412_v58 = vcombine.high %v561_v60, %v565_v61  ;;  %v4414_v63 = vcombine.high %v562_v2, %v566_v42  ;;  %v609_v62 = vld [vmem:[#allocation7 + $0xc40] sm:$0xff] }
  0xd6   :  { %v613_v49 = vld [vmem:[#allocation7 + $0xc60] sm:$0xff] }
  0xd8   :  { %3422 = vmatpush1.bf16.msra.mxu0 %v4355_v11  ;;  %3586 = vmatpush1.bf16.msra.mxu1 %v4357_v12  ;;  %v574_v11 = vld [vmem:[#allocation7 + $0xb28] sm:$0xff]  ;;  %v4411_v12 = vcombine.low %v561_v60, %v565_v61  ;;  %v4451_v60 = vcombine.low %v601_v55, %v605_v32 }
  0xd9   :  { %3423 = vmatprep.subr.bf16.mxu0 %v4364_v13  ;;  %3587 = vmatprep.subr.bf16.mxu1 %v4366_v7  ;;  %v4413_v13 = vcombine.low %v562_v2, %v566_v42  ;;  %v4420_v7 = vcombine.high %v569_v5, %v573_v1  ;;  %v4422_v16 = vcombine.high %v570_v8, %v574_v11 }
  0xda   :  { %v4460_v2 = vcombine.high %v609_v62, %v613_v49 }
  0xdc   :  { %3424 = vmatpush1.bf16.msra.mxu0 %v4363_v18  ;;  %3588 = vmatpush1.bf16.msra.mxu1 %v4365_v19  ;;  %v582_v18 = vld [vmem:[#allocation7 + $0xb68] sm:$0xff]  ;;  %v4419_v19 = vcombine.low %v569_v5, %v573_v1 }
  0xdd   :  { %3425 = vmatprep.subr.bf16.mxu0 %v4372_v6  ;;  %3589 = vmatprep.subr.bf16.mxu1 %v4374_v20  ;;  %v4421_v6 = vcombine.low %v570_v8, %v574_v11  ;;  %v4428_v20 = vcombine.high %v577_v14, %v581_v26  ;;  %v4430_v22 = vcombine.high %v578_v17, %v582_v18  ;;  %v622_v5 = vld [vmem:[#allocation7 + $0xca8] sm:$0xff] }
  0xe0   :  { %3426 = vmatpush1.bf16.msra.mxu0 %v4371_v24  ;;  %3590 = vmatpush1.bf16.msra.mxu1 %v4373_v27  ;;  %v590_v24 = vld [vmem:[#allocation7 + $0xba8] sm:$0xff]  ;;  %v4427_v27 = vcombine.low %v577_v14, %v581_v26 }
  0xe1   :  { %3427 = vmatprep.subr.bf16.mxu0 %v4380_v25  ;;  %3591 = vmatprep.subr.bf16.mxu1 %v4382_v33  ;;  %v4429_v25 = vcombine.low %v578_v17, %v582_v18  ;;  %v4436_v33 = vcombine.high %v585_v15, %v589_v34  ;;  %v4438_v45 = vcombine.high %v586_v23, %v590_v24 }
  0xe4   :  { %3428 = vmatpush1.bf16.msra.mxu0 %v4379_v44  ;;  %3592 = vmatpush1.bf16.msra.mxu1 %v4381_v36  ;;  %v594_v44 = vld [vmem:[#allocation7 + $0xbc8] sm:$0xff] }
  0xe5   :  { %3429 = vmatprep.subr.bf16.mxu0 %v4388_v54  ;;  %3593 = vmatprep.subr.bf16.mxu1 %v4390_v37  ;;  %v598_v36 = vld [vmem:[#allocation7 + $0xbe8] sm:$0xff]  ;;  %v4435_v54 = vcombine.low %v585_v15, %v589_v34  ;;  %v4437_v37 = vcombine.low %v586_v23, %v590_v24 }
  0xe6   :  { %v4446_v9 = vcombine.high %v594_v44, %v598_v36  ;;  %v4445_v51 = vcombine.low %v594_v44, %v598_v36  ;;  %v649_v36 = vld [vmem:[#allocation7 + $0xd80] sm:$0xff] }
  0xe8   :  { %3430 = vmatpush1.bf16.msra.mxu0 %v4387_v40  ;;  %3594 = vmatpush1.bf16.msra.mxu1 %v4389_v41  ;;  %v5002_v40 = vrot.slane %v184_v35, %v4925_v30  ;;  %v602_v41 = vld [vmem:[#allocation7 + $0xc08] sm:$0xff] }
  0xe9   :  { %3431 = vmatprep.subr.bf16.mxu0 %v4396_v43  ;;  %3595 = vmatprep.subr.bf16.mxu1 %v4398_v46  ;;  %v606_v43 = vld [vmem:[#allocation7 + $0xc28] sm:$0xff]  ;;  %v4443_v46 = vcombine.low %v593_v29, %v597_v31 }
  0xea   :  { %v4454_v48 = vcombine.high %v602_v41, %v606_v43  ;;  %v4453_v61 = vcombine.low %v602_v41, %v606_v43  ;;  %v657_v43 = vld [vmem:[#allocation7 + $0xdc0] sm:$0xff] }
  0xec   :  { %3432 = vmatpush1.bf16.msra.mxu0 %v4395_v50  ;;  %3596 = vmatpush1.bf16.msra.mxu1 %v4397_v52  ;;  %v200_v50 = vcombine.high %v5002_v40, %v5002_v40  ;;  %v5008_v52 = vpack.c.bf16 %v4985_v21, %v4985_v21  ;;  %v4459_v21 = vcombine.low %v609_v62, %v613_v49 }
  0xed   :  { %3433 = vmatprep.subr.bf16.mxu0 %v4404_v56  ;;  %3597 = vmatprep.subr.bf16.mxu1 %v4406_v53  ;;  %v610_v56 = vld [vmem:[#allocation7 + $0xc48] sm:$0xff] }
  0xee   :  { %v614_v53 = vld [vmem:[#allocation7 + $0xc68] sm:$0xff] }
  0xef   :  { %v4462_v42 = vcombine.high %v610_v56, %v614_v53  ;;  %v4461_v1 = vcombine.low %v610_v56, %v614_v53  ;;  %v665_v56 = vld [vmem:[#allocation7 + $0xe00] sm:$0xff] }
  0xf0   :  { %3434 = vmatpush1.bf16.msra.mxu0 %v4403_v3  ;;  %3598 = vmatpush1.bf16.msra.mxu1 %v4405_v4  ;;  %v617_v3 = vld [vmem:[#allocation7 + $0xc80] sm:$0xff] }
  0xf1   :  { %3435 = vmatprep.subr.bf16.mxu0 %v4412_v58  ;;  %3599 = vmatprep.subr.bf16.mxu1 %v4414_v63  ;;  %v621_v4 = vld [vmem:[#allocation7 + $0xca0] sm:$0xff]  ;;  %v5010_v58 = vpack.c.bf16 %v200_v50, %v200_v50  ;;  %v618_v63 = vld [vmem:[#allocation7 + $0xc88] sm:$0xff] }
  0xf2   :  { %v4468_v8 = vcombine.high %v617_v3, %v621_v4  ;;  %v4470_v11 = vcombine.high %v618_v63, %v622_v5  ;;  %v4467_v14 = vcombine.low %v617_v3, %v621_v4  ;;  %v4469_v26 = vcombine.low %v618_v63, %v622_v5  ;;  %v669_v53 = vld [vmem:[#allocation7 + $0xe20] sm:$0xff] }
  0xf3   :  { %v4516_v3 = vcombine.high %v665_v56, %v669_v53  ;;  %v673_v63 = vld [vmem:[#allocation7 + $0xe40] sm:$0xff] }
  0xf4   :  { %3436 = vmatpush1.bf16.msra.mxu0 %v4411_v12  ;;  %3600 = vmatpush1.bf16.msra.mxu1 %v4413_v13  ;;  %v625_v12 = vld [vmem:[#allocation7 + $0xcc0] sm:$0xff] }
  0xf5   :  { %3437 = vmatprep.subr.bf16.mxu0 %v4420_v7  ;;  %3601 = vmatprep.subr.bf16.mxu1 %v4422_v16  ;;  %v629_v13 = vld [vmem:[#allocation7 + $0xce0] sm:$0xff]  ;;  %v626_v7 = vld [vmem:[#allocation7 + $0xcc8] sm:$0xff] }
  0xf6   :  { %v630_v16 = vld [vmem:[#allocation7 + $0xce8] sm:$0xff]  ;;  %v4476_v17 = vcombine.high %v625_v12, %v629_v13  ;;  %v4475_v15 = vcombine.low %v625_v12, %v629_v13  ;;  %v677_v5 = vld [vmem:[#allocation7 + $0xe60] sm:$0xff] }
  0xf7   :  { %v4478_v18 = vcombine.high %v626_v7, %v630_v16  ;;  %v4477_v34 = vcombine.low %v626_v7, %v630_v16  ;;  %v4524_v12 = vcombine.high %v673_v63, %v677_v5  ;;  %v681_v7 = vld [vmem:[#allocation7 + $0xe80] sm:$0xff] }
  0xf8   :  { %3438 = vmatpush1.bf16.msra.mxu0 %v4419_v19  ;;  %3602 = vmatpush1.bf16.msra.mxu1 %v4421_v6  ;;  %v633_v19 = vld [vmem:[#allocation7 + $0xd00] sm:$0xff] }
  0xf9   :  { %3439 = vmatprep.subr.bf16.mxu0 %v4428_v20  ;;  %3603 = vmatprep.subr.bf16.mxu1 %v4430_v22  ;;  %v637_v6 = vld [vmem:[#allocation7 + $0xd20] sm:$0xff]  ;;  %v634_v20 = vld [vmem:[#allocation7 + $0xd08] sm:$0xff] }
  0xfa   :  { %v638_v22 = vld [vmem:[#allocation7 + $0xd28] sm:$0xff]  ;;  %v4484_v23 = vcombine.high %v633_v19, %v637_v6  ;;  %v4483_v29 = vcombine.low %v633_v19, %v637_v6  ;;  %v685_v16 = vld [vmem:[#allocation7 + $0xea0] sm:$0xff] }
  0xfb   :  { %v4486_v24 = vcombine.high %v634_v20, %v638_v22  ;;  %v4485_v31 = vcombine.low %v634_v20, %v638_v22  ;;  %v4532_v19 = vcombine.high %v681_v7, %v685_v16  ;;  %v689_v20 = vld [vmem:[#allocation7 + $0xec0] sm:$0xff] }
  0xfc   :  { %3440 = vmatpush1.bf16.msra.mxu0 %v4427_v27  ;;  %3604 = vmatpush1.bf16.msra.mxu1 %v4429_v25  ;;  %v641_v27 = vld [vmem:[#allocation7 + $0xd40] sm:$0xff] }
  0xfd   :  { %3441 = vmatprep.subr.bf16.mxu0 %v4436_v33  ;;  %3605 = vmatprep.subr.bf16.mxu1 %v4438_v45  ;;  %v645_v25 = vld [vmem:[#allocation7 + $0xd60] sm:$0xff]  ;;  %v642_v33 = vld [vmem:[#allocation7 + $0xd48] sm:$0xff] }
  0xfe   :  { %v646_v45 = vld [vmem:[#allocation7 + $0xd68] sm:$0xff]  ;;  %v4492_v35 = vcombine.high %v641_v27, %v645_v25  ;;  %v693_v22 = vld [vmem:[#allocation7 + $0xee0] sm:$0xff] }
  0xff   :  { %v4494_v44 = vcombine.high %v642_v33, %v646_v45  ;;  %v4493_v55 = vcombine.low %v642_v33, %v646_v45  ;;  %v697_v33 = vld [vmem:[#allocation7 + $0xf00] sm:$0xff] }
 0x100   :  { %3442 = vmatpush1.bf16.msra.mxu0 %v4435_v54  ;;  %3606 = vmatpush1.bf16.msra.mxu1 %v4437_v37  ;;  %v653_v54 = vld [vmem:[#allocation7 + $0xda0] sm:$0xff]  ;;  %v650_v37 = vld [vmem:[#allocation7 + $0xd88] sm:$0xff] }
 0x101   :  { %3443 = vmatprep.subr.bf16.mxu0 %v4444_v38  ;;  %3607 = vmatprep.subr.bf16.mxu1 %v4446_v9  ;;  %v654_v38 = vld [vmem:[#allocation7 + $0xda8] sm:$0xff]  ;;  %v4491_v9 = vcombine.low %v641_v27, %v645_v25  ;;  %v4500_v32 = vcombine.high %v649_v36, %v653_v54  ;;  %v4540_v27 = vcombine.high %v689_v20, %v693_v22  ;;  %v701_v45 = vld [vmem:[#allocation7 + $0xf20] sm:$0xff] }
 0x102   :  { %v4502_v41 = vcombine.high %v650_v37, %v654_v38  ;;  %v4501_v62 = vcombine.low %v650_v37, %v654_v38  ;;  %v705_v37 = vld [vmem:[#allocation7 + $0xf40] sm:$0xff] }
 0x103   :  { %v709_v38 = vld [vmem:[#allocation7 + $0xf60] sm:$0xff] }
 0x104   :  { %3444 = vmatpush1.bf16.msra.mxu0 %v4443_v46  ;;  %3608 = vmatpush1.bf16.msra.mxu1 %v4445_v51  ;;  %v661_v46 = vld [vmem:[#allocation7 + $0xde0] sm:$0xff]  ;;  %v658_v51 = vld [vmem:[#allocation7 + $0xdc8] sm:$0xff] }
 0x105   :  { %3454 = vmatprep.subr.bf16.mxu0 %v4452_v47  ;;  %3618 = vmatprep.subr.bf16.mxu1 %v4454_v48  ;;  %v662_v47 = vld [vmem:[#allocation7 + $0xde8] sm:$0xff]  ;;  %v4499_v48 = vcombine.low %v649_v36, %v653_v54  ;;  %v4508_v49 = vcombine.high %v657_v43, %v661_v46  ;;  %v4548_v36 = vcombine.high %v697_v33, %v701_v45 }
 0x106   :  { %v4510_v50 = vcombine.high %v658_v51, %v662_v47 }
 0x107   :  { %3446 = vmatmul.mubr.bf16.vlgmr.msra.gmra.mrb[0].mxu0 %v5008_v52  ;;  %3610 = vmatmul.mubr.bf16.vlgmr.msra.gmra.mrb[0].mxu1 %v5008_v52 }
 0x108   :  { %3455 = vmatpush1.bf16.msra.mxu0 %v4451_v60  ;;  %3619 = vmatpush1.bf16.msra.mxu1 %v4453_v61  ;;  %v666_v60 = vld [vmem:[#allocation7 + $0xe08] sm:$0xff] }
 0x109   :  { %3456 = vmatprep.subr.bf16.mxu0 %v4460_v2  ;;  %3620 = vmatprep.subr.bf16.mxu1 %v4462_v42  ;;  %v670_v61 = vld [vmem:[#allocation7 + $0xe28] sm:$0xff]  ;;  %v4507_v2 = vcombine.low %v657_v43, %v661_v46  ;;  %v4509_v42 = vcombine.low %v658_v51, %v662_v47  ;;  %v4556_v43 = vcombine.high %v705_v37, %v709_v38  ;;  %v713_v51 = vld [vmem:[#allocation7 + $0xf80] sm:$0xff] }
 0x10a   :  { %3486 = vmatprep.mubr.bf16.mxu0 %v5010_v58  ;;  %3650 = vmatprep.mubr.bf16.mxu1 %v5010_v58  ;;  %v4518_v4 = vcombine.high %v666_v60, %v670_v61  ;;  %v717_v47 = vld [vmem:[#allocation7 + $0xfa0] sm:$0xff] }
 0x10c   :  { %3457 = vmatpush1.bf16.msra.mxu0 %v4459_v21  ;;  %3621 = vmatpush1.bf16.msra.mxu1 %v4461_v1  ;;  %v674_v21 = vld [vmem:[#allocation7 + $0xe48] sm:$0xff] }
 0x10d   :  { %3458 = vmatprep.subr.bf16.mxu0 %v4468_v8  ;;  %3622 = vmatprep.subr.bf16.mxu1 %v4470_v11  ;;  %v678_v1 = vld [vmem:[#allocation7 + $0xe68] sm:$0xff]  ;;  %v4515_v8 = vcombine.low %v665_v56, %v669_v53  ;;  %v4517_v11 = vcombine.low %v666_v60, %v670_v61  ;;  %v4564_v56 = vcombine.high %v713_v51, %v717_v47  ;;  %v721_v60 = vld [vmem:[#allocation7 + $0xfc0] sm:$0xff] }
 0x10e   :  { %v4526_v13 = vcombine.high %v674_v21, %v678_v1  ;;  %v725_v61 = vld [vmem:[#allocation7 + $0xfe0] sm:$0xff] }
 0x110   :  { %3459 = vmatpush1.bf16.msra.mxu0 %v4467_v14  ;;  %3623 = vmatpush1.bf16.msra.mxu1 %v4469_v26  ;;  %v682_v14 = vld [vmem:[#allocation7 + $0xe88] sm:$0xff] }
 0x111   :  { %3460 = vmatprep.subr.bf16.mxu0 %v4476_v17  ;;  %3624 = vmatprep.subr.bf16.mxu1 %v4478_v18  ;;  %v686_v26 = vld [vmem:[#allocation7 + $0xea8] sm:$0xff]  ;;  %v4523_v17 = vcombine.low %v673_v63, %v677_v5  ;;  %v4525_v18 = vcombine.low %v674_v21, %v678_v1  ;;  %v4572_v63 = vcombine.high %v721_v60, %v725_v61  ;;  %v219_v21 = vld [vmem:[#allocation7 + $0x10] sm:$0xff] }
 0x112   :  { %v4534_v6 = vcombine.high %v682_v14, %v686_v26  ;;  %v223_v1 = vld [vmem:[#allocation7 + $0x30] sm:$0xff] }
 0x114   :  { %3461 = vmatpush1.bf16.msra.mxu0 %v4475_v15  ;;  %3625 = vmatpush1.bf16.msra.mxu1 %v4477_v34  ;;  %v690_v15 = vld [vmem:[#allocation7 + $0xec8] sm:$0xff] }
 0x115   :  { %3462 = vmatprep.subr.bf16.mxu0 %v4484_v23  ;;  %3626 = vmatprep.subr.bf16.mxu1 %v4486_v24  ;;  %v694_v34 = vld [vmem:[#allocation7 + $0xee8] sm:$0xff]  ;;  %v4531_v23 = vcombine.low %v681_v7, %v685_v16  ;;  %v4533_v24 = vcombine.low %v682_v14, %v686_v26  ;;  %v4072_v7 = vcombine.high %v219_v21, %v223_v1  ;;  %v227_v14 = vld [vmem:[#allocation7 + $0x50] sm:$0xff] }
 0x116   :  { %v4542_v25 = vcombine.high %v690_v15, %v694_v34  ;;  %v231_v26 = vld [vmem:[#allocation7 + $0x70] sm:$0xff] }
 0x118   :  { %3463 = vmatpush1.bf16.msra.mxu0 %v4483_v29  ;;  %3627 = vmatpush1.bf16.msra.mxu1 %v4485_v31  ;;  %v698_v29 = vld [vmem:[#allocation7 + $0xf08] sm:$0xff] }
 0x119   :  { %3464 = vmatprep.subr.bf16.mxu0 %v4492_v35  ;;  %3628 = vmatprep.subr.bf16.mxu1 %v4494_v44  ;;  %v702_v31 = vld [vmem:[#allocation7 + $0xf28] sm:$0xff]  ;;  %v4539_v35 = vcombine.low %v689_v20, %v693_v22  ;;  %v4541_v44 = vcombine.low %v690_v15, %v694_v34  ;;  %v4080_v22 = vcombine.high %v227_v14, %v231_v26  ;;  %v235_v34 = vld [vmem:[#allocation7 + $0x90] sm:$0xff] }
 0x11a   :  { %v4550_v54 = vcombine.high %v698_v29, %v702_v31 }
 0x11c   :  { %3465 = vmatpush1.bf16.msra.mxu0 %v4491_v9  ;;  %3629 = vmatpush1.bf16.msra.mxu1 %v4493_v55  ;;  %v706_v9 = vld [vmem:[#allocation7 + $0xf48] sm:$0xff] }
 0x11d   :  { %3466 = vmatprep.subr.bf16.mxu0 %v4500_v32  ;;  %3630 = vmatprep.subr.bf16.mxu1 %v4502_v41  ;;  %v710_v55 = vld [vmem:[#allocation7 + $0xf68] sm:$0xff]  ;;  %v4547_v32 = vcombine.low %v697_v33, %v701_v45  ;;  %v4549_v41 = vcombine.low %v698_v29, %v702_v31  ;;  %v243_v29 = vld [vmem:[#allocation7 + $0xd0] sm:$0xff] }
 0x11e   :  { %v4558_v46 = vcombine.high %v706_v9, %v710_v55  ;;  %v247_v31 = vld [vmem:[#allocation7 + $0xf0] sm:$0xff] }
 0x120   :  { %3467 = vmatpush1.bf16.msra.mxu0 %v4499_v48  ;;  %3631 = vmatpush1.bf16.msra.mxu1 %v4501_v62  ;;  %v714_v48 = vld [vmem:[#allocation7 + $0xf88] sm:$0xff] }
 0x121   :  { %3468 = vmatprep.subr.bf16.mxu0 %v4508_v49  ;;  %3632 = vmatprep.subr.bf16.mxu1 %v4510_v50  ;;  %v718_v62 = vld [vmem:[#allocation7 + $0xfa8] sm:$0xff]  ;;  %v4555_v49 = vcombine.low %v705_v37, %v709_v38  ;;  %v4557_v50 = vcombine.low %v706_v9, %v710_v55  ;;  %v4096_v37 = vcombine.high %v243_v29, %v247_v31  ;;  %v251_v9 = vld [vmem:[#allocation7 + $0x110] sm:$0xff] }
 0x122   :  { %v4566_v53 = vcombine.high %v714_v48, %v718_v62  ;;  %v255_v55 = vld [vmem:[#allocation7 + $0x130] sm:$0xff] }
 0x124   :  { %3469 = vmatpush1.bf16.msra.mxu0 %v4507_v2  ;;  %3633 = vmatpush1.bf16.msra.mxu1 %v4509_v42  ;;  %v722_v2 = vld [vmem:[#allocation7 + $0xfc8] sm:$0xff] }
 0x125   :  { %3470 = vmatprep.subr.bf16.mxu0 %v4516_v3  ;;  %3634 = vmatprep.subr.bf16.mxu1 %v4518_v4  ;;  %v726_v42 = vld [vmem:[#allocation7 + $0xfe8] sm:$0xff]  ;;  %v4563_v3 = vcombine.low %v713_v51, %v717_v47  ;;  %v4565_v4 = vcombine.low %v714_v48, %v718_v62  ;;  %v4104_v51 = vcombine.high %v251_v9, %v255_v55  ;;  %v259_v47 = vld [vmem:[#allocation7 + $0x150] sm:$0xff]  ;;  %v260_v62 = vld [vmem:[#allocation7 + $0x158] sm:$0xff] }
 0x126   :  { %v4574_v5 = vcombine.high %v722_v2, %v726_v42  ;;  %v263_v48 = vld [vmem:[#allocation7 + $0x170] sm:$0xff] }
 0x128   :  { %3471 = vmatpush1.bf16.msra.mxu0 %v4515_v8  ;;  %3635 = vmatpush1.bf16.msra.mxu1 %v4517_v11  ;;  %v220_v8 = vld [vmem:[#allocation7 + $0x18] sm:$0xff] }
 0x129   :  { %3472 = vmatprep.subr.bf16.mxu0 %v4524_v12  ;;  %3636 = vmatprep.subr.bf16.mxu1 %v4526_v13  ;;  %v224_v11 = vld [vmem:[#allocation7 + $0x38] sm:$0xff]  ;;  %v4571_v12 = vcombine.low %v721_v60, %v725_v61  ;;  %v4573_v13 = vcombine.low %v722_v2, %v726_v42  ;;  %v267_v61 = vld [vmem:[#allocation7 + $0x190] sm:$0xff] }
 0x12a   :  { %v4074_v16 = vcombine.high %v220_v8, %v224_v11  ;;  %v4073_v20 = vcombine.low %v220_v8, %v224_v11  ;;  %v271_v2 = vld [vmem:[#allocation7 + $0x1b0] sm:$0xff]  ;;  %v268_v42 = vld [vmem:[#allocation7 + $0x198] sm:$0xff] }
 0x12b   :  { %v279_v8 = vld [vmem:[#allocation7 + $0x1f0] sm:$0xff]  ;;  %v276_v11 = vld [vmem:[#allocation7 + $0x1d8] sm:$0xff] }
 0x12c   :  { %3473 = vmatpush1.bf16.msra.mxu0 %v4523_v17  ;;  %3637 = vmatpush1.bf16.msra.mxu1 %v4525_v18  ;;  %v5018_v17 = vpack.c.bf16 %v5002_v40, %v5002_v40  ;;  %v228_v18 = vld [vmem:[#allocation7 + $0x58] sm:$0xff]  ;;  %v4079_v40 = vcombine.low %v227_v14, %v231_v26  ;;  %v283_v26 = vld [vmem:[#allocation7 + $0x210] sm:$0xff] }
 0x12d   :  { %3474 = vmatprep.subr.bf16.mxu0 %v4532_v19  ;;  %3638 = vmatprep.subr.bf16.mxu1 %v4534_v6  ;;  %v232_v19 = vld [vmem:[#allocation7 + $0x78] sm:$0xff]  ;;  %v4071_v6 = vcombine.low %v219_v21, %v223_v1  ;;  %v275_v1 = vld [vmem:[#allocation7 + $0x1d0] sm:$0xff] }
 0x12e   :  { %v4082_v15 = vcombine.high %v228_v18, %v232_v19 }
 0x130   :  { %3475 = vmatpush1.bf16.msra.mxu0 %v4531_v23  ;;  %3639 = vmatpush1.bf16.msra.mxu1 %v4533_v24  ;;  %v239_v23 = vld [vmem:[#allocation7 + $0xb0] sm:$0xff]  ;;  %v236_v24 = vld [vmem:[#allocation7 + $0x98] sm:$0xff] }
 0x131   :  { %3476 = vmatprep.subr.bf16.mxu0 %v4540_v27  ;;  %3640 = vmatprep.subr.bf16.mxu1 %v4542_v25  ;;  %v240_v27 = vld [vmem:[#allocation7 + $0xb8] sm:$0xff]  ;;  %v4081_v25 = vcombine.low %v228_v18, %v232_v19  ;;  %v4088_v33 = vcombine.high %v235_v34, %v239_v23  ;;  %v287_v18 = vld [vmem:[#allocation7 + $0x230] sm:$0xff] }
 0x132   :  { %v4090_v45 = vcombine.high %v236_v24, %v240_v27  ;;  %v284_v19 = vld [vmem:[#allocation7 + $0x218] sm:$0xff] }
 0x134   :  { %3477 = vmatpush1.bf16.msra.mxu0 %v4539_v35  ;;  %3641 = vmatpush1.bf16.msra.mxu1 %v4541_v44  ;;  %v244_v35 = vld [vmem:[#allocation7 + $0xd8] sm:$0xff] }
 0x135   :  { %3478 = vmatprep.subr.bf16.mxu0 %v4548_v36  ;;  %3642 = vmatprep.subr.bf16.mxu1 %v4550_v54  ;;  %v248_v44 = vld [vmem:[#allocation7 + $0xf8] sm:$0xff]  ;;  %v4087_v36 = vcombine.low %v235_v34, %v239_v23  ;;  %v4089_v54 = vcombine.low %v236_v24, %v240_v27  ;;  %v291_v23 = vld [vmem:[#allocation7 + $0x250] sm:$0xff] }
 0x136   :  { %v4098_v38 = vcombine.high %v244_v35, %v248_v44  ;;  %v295_v24 = vld [vmem:[#allocation7 + $0x270] sm:$0xff]  ;;  %v292_v27 = vld [vmem:[#allocation7 + $0x258] sm:$0xff] }
 0x138   :  { %3479 = vmatpush1.bf16.msra.mxu0 %v4547_v32  ;;  %3643 = vmatpush1.bf16.msra.mxu1 %v4549_v41  ;;  %v252_v32 = vld [vmem:[#allocation7 + $0x118] sm:$0xff] }
 0x139   :  { %3480 = vmatprep.subr.bf16.mxu0 %v4556_v43  ;;  %3644 = vmatprep.subr.bf16.mxu1 %v4558_v46  ;;  %v256_v41 = vld [vmem:[#allocation7 + $0x138] sm:$0xff]  ;;  %v4095_v43 = vcombine.low %v243_v29, %v247_v31  ;;  %v4097_v46 = vcombine.low %v244_v35, %v248_v44  ;;  %v299_v31 = vld [vmem:[#allocation7 + $0x290] sm:$0xff] }
 0x13a   :  { %v303_v35 = vld [vmem:[#allocation7 + $0x2b0] sm:$0xff]  ;;  %v300_v44 = vld [vmem:[#allocation7 + $0x298] sm:$0xff] }
 0x13c   :  { %3481 = vmatpush1.bf16.msra.mxu0 %v4555_v49  ;;  %3645 = vmatpush1.bf16.msra.mxu1 %v4557_v50  ;;  %v264_v49 = vld [vmem:[#allocation7 + $0x178] sm:$0xff]  ;;  %v4103_v50 = vcombine.low %v251_v9, %v255_v55  ;;  %v307_v55 = vld [vmem:[#allocation7 + $0x2d0] sm:$0xff] }
 0x13d   :  { %3482 = vmatprep.subr.bf16.mxu0 %v4564_v56  ;;  %3646 = vmatprep.subr.bf16.mxu1 %v4566_v53  ;;  %v4105_v56 = vcombine.low %v252_v32, %v256_v41  ;;  %v4112_v53 = vcombine.high %v259_v47, %v263_v48  ;;  %v4114_v60 = vcombine.high %v260_v62, %v264_v49 }
 0x140   :  { %3483 = vmatpush1.bf16.msra.mxu0 %v4563_v3  ;;  %3647 = vmatpush1.bf16.msra.mxu1 %v4565_v4  ;;  %v272_v3 = vld [vmem:[#allocation7 + $0x1b8] sm:$0xff]  ;;  %v4111_v4 = vcombine.low %v259_v47, %v263_v48  ;;  %v315_v48 = vld [vmem:[#allocation7 + $0x310] sm:$0xff] }
 0x141   :  { %3484 = vmatprep.subr.bf16.mxu0 %v4572_v63  ;;  %3648 = vmatprep.subr.bf16.mxu1 %v4574_v5  ;;  %v4113_v63 = vcombine.low %v260_v62, %v264_v49  ;;  %v4120_v5 = vcombine.high %v267_v61, %v271_v2  ;;  %v4122_v21 = vcombine.high %v268_v42, %v272_v3  ;;  %v319_v62 = vld [vmem:[#allocation7 + $0x330] sm:$0xff]  ;;  %v316_v49 = vld [vmem:[#allocation7 + $0x318] sm:$0xff] }
 0x144   :  { %3485 = vmatpush1.bf16.msra.mxu0 %v4571_v12  ;;  %3649 = vmatpush1.bf16.msra.mxu1 %v4573_v13  ;;  %v280_v12 = vld [vmem:[#allocation7 + $0x1f8] sm:$0xff]  ;;  %v4119_v13 = vcombine.low %v267_v61, %v271_v2  ;;  %v323_v2 = vld [vmem:[#allocation7 + $0x350] sm:$0xff] }
 0x145   :  { %3659 = vmatprep.subr.bf16.mxu0 %v4072_v7  ;;  %3823 = vmatprep.subr.bf16.mxu1 %v4074_v16  ;;  %v4121_v7 = vcombine.low %v268_v42, %v272_v3  ;;  %v4128_v16 = vcombine.high %v275_v1, %v279_v8  ;;  %v4130_v14 = vcombine.high %v276_v11, %v280_v12  ;;  %v327_v42 = vld [vmem:[#allocation7 + $0x370] sm:$0xff]  ;;  %v324_v3 = vld [vmem:[#allocation7 + $0x358] sm:$0xff] }
 0x147   :  { %3487 = vmatmul.mubr.bf16.vlgmr.msra.gmra.mrb[0].mxu0 %v5018_v17  ;;  %3651 = vmatmul.mubr.bf16.vlgmr.msra.gmra.mrb[0].mxu1 %v5018_v17 }
 0x148   :  { %3660 = vmatpush1.bf16.msra.mxu0 %v4071_v6  ;;  %3824 = vmatpush1.bf16.msra.mxu1 %v4073_v20  ;;  %v288_v6 = vld [vmem:[#allocation7 + $0x238] sm:$0xff]  ;;  %v4127_v20 = vcombine.low %v275_v1, %v279_v8  ;;  %v331_v8 = vld [vmem:[#allocation7 + $0x390] sm:$0xff] }
 0x149   :  { %3661 = vmatprep.subr.bf16.mxu0 %v4080_v22  ;;  %3825 = vmatprep.subr.bf16.mxu1 %v4082_v15  ;;  %v4129_v22 = vcombine.low %v276_v11, %v280_v12  ;;  %v4136_v15 = vcombine.high %v283_v26, %v287_v18  ;;  %v4138_v34 = vcombine.high %v284_v19, %v288_v6  ;;  %v335_v11 = vld [vmem:[#allocation7 + $0x3b0] sm:$0xff]  ;;  %v332_v12 = vld [vmem:[#allocation7 + $0x398] sm:$0xff] }
 0x14a   :  { %3691 = vmatprep.mubr.bf16.mxu0 %v4932_v59  ;;  %3855 = vmatprep.mubr.bf16.mxu1 %v4932_v59  ;;  %v4106_v59 = vcombine.high %v252_v32, %v256_v41  ;;  %v311_v32 = vld [vmem:[#allocation7 + $0x2f0] sm:$0xff]  ;;  %v308_v41 = vld [vmem:[#allocation7 + $0x2d8] sm:$0xff] }
 0x14c   :  { %3662 = vmatpush1.bf16.msra.mxu0 %v4079_v40  ;;  %3826 = vmatpush1.bf16.msra.mxu1 %v4081_v25  ;;  %v296_v40 = vld [vmem:[#allocation7 + $0x278] sm:$0xff]  ;;  %v4135_v25 = vcombine.low %v283_v26, %v287_v18  ;;  %v339_v18 = vld [vmem:[#allocation7 + $0x3d0] sm:$0xff] }
 0x14d   :  { %3663 = vmatprep.subr.bf16.mxu0 %v4088_v33  ;;  %3827 = vmatprep.subr.bf16.mxu1 %v4090_v45  ;;  %v4137_v33 = vcombine.low %v284_v19, %v288_v6  ;;  %v4144_v45 = vcombine.high %v291_v23, %v295_v24  ;;  %v4146_v29 = vcombine.high %v292_v27, %v296_v40  ;;  %v343_v19 = vld [vmem:[#allocation7 + $0x3f0] sm:$0xff]  ;;  %v340_v6 = vld [vmem:[#allocation7 + $0x3d8] sm:$0xff] }
 0x150   :  { %3664 = vmatpush1.bf16.msra.mxu0 %v4087_v36  ;;  %3828 = vmatpush1.bf16.msra.mxu1 %v4089_v54  ;;  %v304_v36 = vld [vmem:[#allocation7 + $0x2b8] sm:$0xff]  ;;  %v4143_v54 = vcombine.low %v291_v23, %v295_v24  ;;  %v347_v24 = vld [vmem:[#allocation7 + $0x410] sm:$0xff] }
 0x151   :  { %3665 = vmatprep.subr.bf16.mxu0 %v4096_v37  ;;  %3829 = vmatprep.subr.bf16.mxu1 %v4098_v38  ;;  %v4145_v37 = vcombine.low %v292_v27, %v296_v40  ;;  %v4152_v38 = vcombine.high %v299_v31, %v303_v35  ;;  %v4154_v9 = vcombine.high %v300_v44, %v304_v36  ;;  %v351_v27 = vld [vmem:[#allocation7 + $0x430] sm:$0xff]  ;;  %v348_v40 = vld [vmem:[#allocation7 + $0x418] sm:$0xff] }
 0x154   :  { %3666 = vmatpush1.bf16.msra.mxu0 %v4095_v43  ;;  %3830 = vmatpush1.bf16.msra.mxu1 %v4097_v46  ;;  %v312_v43 = vld [vmem:[#allocation7 + $0x2f8] sm:$0xff]  ;;  %v4151_v46 = vcombine.low %v299_v31, %v303_v35  ;;  %v355_v35 = vld [vmem:[#allocation7 + $0x450] sm:$0xff] }
 0x155   :  { %3667 = vmatprep.subr.bf16.mxu0 %v4104_v51  ;;  %3831 = vmatprep.subr.bf16.mxu1 %v4106_v59  ;;  %v4153_v51 = vcombine.low %v300_v44, %v304_v36  ;;  %v4160_v59 = vcombine.high %v307_v55, %v311_v32  ;;  %v4162_v47 = vcombine.high %v308_v41, %v312_v43  ;;  %v359_v44 = vld [vmem:[#allocation7 + $0x470] sm:$0xff]  ;;  %v356_v36 = vld [vmem:[#allocation7 + $0x458] sm:$0xff] }
 0x158   :  { %3668 = vmatpush1.bf16.msra.mxu0 %v4103_v50  ;;  %3832 = vmatpush1.bf16.msra.mxu1 %v4105_v56  ;;  %v320_v50 = vld [vmem:[#allocation7 + $0x338] sm:$0xff]  ;;  %v4159_v56 = vcombine.low %v307_v55, %v311_v32  ;;  %v363_v32 = vld [vmem:[#allocation7 + $0x490] sm:$0xff] }
 0x159   :  { %3669 = vmatprep.subr.bf16.mxu0 %v4112_v53  ;;  %3833 = vmatprep.subr.bf16.mxu1 %v4114_v60  ;;  %v4161_v53 = vcombine.low %v308_v41, %v312_v43  ;;  %v4168_v60 = vcombine.high %v315_v48, %v319_v62  ;;  %v4170_v61 = vcombine.high %v316_v49, %v320_v50  ;;  %v367_v41 = vld [vmem:[#allocation7 + $0x4b0] sm:$0xff]  ;;  %v364_v43 = vld [vmem:[#allocation7 + $0x498] sm:$0xff] }
 0x15c   :  { %3670 = vmatpush1.bf16.msra.mxu0 %v4111_v4  ;;  %3834 = vmatpush1.bf16.msra.mxu1 %v4113_v63  ;;  %v328_v4 = vld [vmem:[#allocation7 + $0x378] sm:$0xff]  ;;  %v4167_v63 = vcombine.low %v315_v48, %v319_v62  ;;  %v371_v62 = vld [vmem:[#allocation7 + $0x4d0] sm:$0xff] }
 0x15d   :  { %3671 = vmatprep.subr.bf16.mxu0 %v4120_v5  ;;  %3835 = vmatprep.subr.bf16.mxu1 %v4122_v21  ;;  %v4169_v5 = vcombine.low %v316_v49, %v320_v50  ;;  %v4176_v21 = vcombine.high %v323_v2, %v327_v42  ;;  %v4178_v1 = vcombine.high %v324_v3, %v328_v4  ;;  %v375_v49 = vld [vmem:[#allocation7 + $0x4f0] sm:$0xff]  ;;  %v372_v50 = vld [vmem:[#allocation7 + $0x4d8] sm:$0xff] }
 0x160   :  { %3672 = vmatpush1.bf16.msra.mxu0 %v4119_v13  ;;  %3836 = vmatpush1.bf16.msra.mxu1 %v4121_v7  ;;  %v336_v13 = vld [vmem:[#allocation7 + $0x3b8] sm:$0xff]  ;;  %v4175_v7 = vcombine.low %v323_v2, %v327_v42  ;;  %v379_v2 = vld [vmem:[#allocation7 + $0x510] sm:$0xff] }
 0x161   :  { %3673 = vmatprep.subr.bf16.mxu0 %v4128_v16  ;;  %3837 = vmatprep.subr.bf16.mxu1 %v4130_v14  ;;  %v4177_v16 = vcombine.low %v324_v3, %v328_v4  ;;  %v4184_v14 = vcombine.high %v331_v8, %v335_v11  ;;  %v4186_v26 = vcombine.high %v332_v12, %v336_v13  ;;  %v383_v42 = vld [vmem:[#allocation7 + $0x530] sm:$0xff]  ;;  %v380_v3 = vld [vmem:[#allocation7 + $0x518] sm:$0xff] }
 0x162   :  { %v384_v4 = vld [vmem:[#allocation7 + $0x538] sm:$0xff] }
 0x164   :  { %3674 = vmatpush1.bf16.msra.mxu0 %v4127_v20  ;;  %3838 = vmatpush1.bf16.msra.mxu1 %v4129_v22  ;;  %v344_v20 = vld [vmem:[#allocation7 + $0x3f8] sm:$0xff]  ;;  %v4183_v22 = vcombine.low %v331_v8, %v335_v11  ;;  %v391_v8 = vld [vmem:[#allocation7 + $0x570] sm:$0xff] }
 0x165   :  { %3675 = vmatprep.subr.bf16.mxu0 %v4136_v15  ;;  %3839 = vmatprep.subr.bf16.mxu1 %v4138_v34  ;;  %v4185_v15 = vcombine.low %v332_v12, %v336_v13  ;;  %v4192_v34 = vcombine.high %v339_v18, %v343_v19  ;;  %v4194_v23 = vcombine.high %v340_v6, %v344_v20  ;;  %v388_v11 = vld [vmem:[#allocation7 + $0x558] sm:$0xff] }
 0x166   :  { %v392_v12 = vld [vmem:[#allocation7 + $0x578] sm:$0xff]  ;;  %v4231_v13 = vcombine.low %v379_v2, %v383_v42 }
 0x168   :  { %3676 = vmatpush1.bf16.msra.mxu0 %v4135_v25  ;;  %3840 = vmatpush1.bf16.msra.mxu1 %v4137_v33  ;;  %v352_v25 = vld [vmem:[#allocation7 + $0x438] sm:$0xff]  ;;  %v4191_v33 = vcombine.low %v339_v18, %v343_v19  ;;  %v399_v18 = vld [vmem:[#allocation7 + $0x5b0] sm:$0xff] }
 0x169   :  { %3677 = vmatprep.subr.bf16.mxu0 %v4144_v45  ;;  %3841 = vmatprep.subr.bf16.mxu1 %v4146_v29  ;;  %v4193_v45 = vcombine.low %v340_v6, %v344_v20  ;;  %v4200_v29 = vcombine.high %v347_v24, %v351_v27  ;;  %v4202_v31 = vcombine.high %v348_v40, %v352_v25  ;;  %v396_v19 = vld [vmem:[#allocation7 + $0x598] sm:$0xff] }
 0x16a   :  { %v400_v6 = vld [vmem:[#allocation7 + $0x5b8] sm:$0xff] }
 0x16c   :  { %3678 = vmatpush1.bf16.msra.mxu0 %v4143_v54  ;;  %3842 = vmatpush1.bf16.msra.mxu1 %v4145_v37  ;;  %v360_v54 = vld [vmem:[#allocation7 + $0x478] sm:$0xff]  ;;  %v4199_v37 = vcombine.low %v347_v24, %v351_v27  ;;  %v407_v24 = vld [vmem:[#allocation7 + $0x5f0] sm:$0xff] }
 0x16d   :  { %3679 = vmatprep.subr.bf16.mxu0 %v4152_v38  ;;  %3843 = vmatprep.subr.bf16.mxu1 %v4154_v9  ;;  %v4201_v38 = vcombine.low %v348_v40, %v352_v25  ;;  %v4208_v9 = vcombine.high %v355_v35, %v359_v44  ;;  %v4210_v55 = vcombine.high %v356_v36, %v360_v54  ;;  %v404_v27 = vld [vmem:[#allocation7 + $0x5d8] sm:$0xff] }
 0x16e   :  { %v408_v40 = vld [vmem:[#allocation7 + $0x5f8] sm:$0xff] }
 0x170   :  { %3680 = vmatpush1.bf16.msra.mxu0 %v4151_v46  ;;  %3844 = vmatpush1.bf16.msra.mxu1 %v4153_v51  ;;  %v368_v46 = vld [vmem:[#allocation7 + $0x4b8] sm:$0xff]  ;;  %v4207_v51 = vcombine.low %v355_v35, %v359_v44  ;;  %v415_v35 = vld [vmem:[#allocation7 + $0x630] sm:$0xff] }
 0x171   :  { %3681 = vmatprep.subr.bf16.mxu0 %v4160_v59  ;;  %3845 = vmatprep.subr.bf16.mxu1 %v4162_v47  ;;  %v4209_v59 = vcombine.low %v356_v36, %v360_v54  ;;  %v4216_v47 = vcombine.high %v363_v32, %v367_v41  ;;  %v4218_v48 = vcombine.high %v364_v43, %v368_v46  ;;  %v412_v44 = vld [vmem:[#allocation7 + $0x618] sm:$0xff] }
 0x172   :  { %v416_v36 = vld [vmem:[#allocation7 + $0x638] sm:$0xff] }
 0x174   :  { %3682 = vmatpush1.bf16.msra.mxu0 %v4159_v56  ;;  %3846 = vmatpush1.bf16.msra.mxu1 %v4161_v53  ;;  %v376_v56 = vld [vmem:[#allocation7 + $0x4f8] sm:$0xff]  ;;  %v4215_v53 = vcombine.low %v363_v32, %v367_v41  ;;  %v423_v32 = vld [vmem:[#allocation7 + $0x670] sm:$0xff] }
 0x175   :  { %3683 = vmatprep.subr.bf16.mxu0 %v4168_v60  ;;  %3847 = vmatprep.subr.bf16.mxu1 %v4170_v61  ;;  %v4224_v60 = vcombine.high %v371_v62, %v375_v49  ;;  %v4226_v61 = vcombine.high %v372_v50, %v376_v56  ;;  %v420_v41 = vld [vmem:[#allocation7 + $0x658] sm:$0xff] }
 0x178   :  { %3684 = vmatpush1.bf16.msra.mxu0 %v4167_v63  ;;  %3848 = vmatpush1.bf16.msra.mxu1 %v4169_v5  ;;  %v4223_v63 = vcombine.low %v371_v62, %v375_v49  ;;  %v4225_v5 = vcombine.low %v372_v50, %v376_v56  ;;  %v431_v62 = vld [vmem:[#allocation7 + $0x6b0] sm:$0xff]  ;;  %v428_v49 = vld [vmem:[#allocation7 + $0x698] sm:$0xff] }
 0x179   :  { %3685 = vmatprep.subr.bf16.mxu0 %v4176_v21  ;;  %3849 = vmatprep.subr.bf16.mxu1 %v4178_v1  ;;  %v4232_v21 = vcombine.high %v379_v2, %v383_v42  ;;  %v387_v1 = vld [vmem:[#allocation7 + $0x550] sm:$0xff]  ;;  %v432_v50 = vld [vmem:[#allocation7 + $0x6b8] sm:$0xff] }
 0x17a   :  { %v4239_v20 = vcombine.low %v387_v1, %v391_v8  ;;  %v439_v2 = vld [vmem:[#allocation7 + $0x6f0] sm:$0xff]  ;;  %v436_v42 = vld [vmem:[#allocation7 + $0x6d8] sm:$0xff] }
 0x17c   :  { %3686 = vmatpush1.bf16.msra.mxu0 %v4175_v7  ;;  %3850 = vmatpush1.bf16.msra.mxu1 %v4177_v16  ;;  %v4233_v7 = vcombine.low %v380_v3, %v384_v4  ;;  %v4240_v16 = vcombine.high %v387_v1, %v391_v8  ;;  %v447_v1 = vld [vmem:[#allocation7 + $0x730] sm:$0xff]  ;;  %v444_v8 = vld [vmem:[#allocation7 + $0x718] sm:$0xff] }
 0x17d   :  { %3687 = vmatprep.subr.bf16.mxu0 %v4184_v14  ;;  %3851 = vmatprep.subr.bf16.mxu1 %v4186_v26  ;;  %v4242_v14 = vcombine.high %v388_v11, %v392_v12  ;;  %v395_v26 = vld [vmem:[#allocation7 + $0x590] sm:$0xff] }
 0x17e   :  { %v4247_v25 = vcombine.low %v395_v26, %v399_v18 }
 0x180   :  { %3688 = vmatpush1.bf16.msra.mxu0 %v4183_v22  ;;  %3852 = vmatpush1.bf16.msra.mxu1 %v4185_v15  ;;  %v4241_v22 = vcombine.low %v388_v11, %v392_v12  ;;  %v4248_v15 = vcombine.high %v395_v26, %v399_v18  ;;  %v448_v11 = vld [vmem:[#allocation7 + $0x738] sm:$0xff]  ;;  %v455_v26 = vld [vmem:[#allocation7 + $0x770] sm:$0xff] }
 0x181   :  { %3689 = vmatprep.subr.bf16.mxu0 %v4192_v34  ;;  %3853 = vmatprep.subr.bf16.mxu1 %v4194_v23  ;;  %v4250_v34 = vcombine.high %v396_v19, %v400_v6  ;;  %v403_v23 = vld [vmem:[#allocation7 + $0x5d0] sm:$0xff]  ;;  %v452_v18 = vld [vmem:[#allocation7 + $0x758] sm:$0xff] }
 0x182   :  { %v4255_v54 = vcombine.low %v403_v23, %v407_v24 }
 0x184   :  { %3690 = vmatpush1.bf16.msra.mxu0 %v4191_v33  ;;  %3854 = vmatpush1.bf16.msra.mxu1 %v4193_v45  ;;  %v4249_v33 = vcombine.low %v396_v19, %v400_v6  ;;  %v4256_v45 = vcombine.high %v403_v23, %v407_v24  ;;  %v456_v19 = vld [vmem:[#allocation7 + $0x778] sm:$0xff]  ;;  %v463_v23 = vld [vmem:[#allocation7 + $0x7b0] sm:$0xff] }
 0x185   :  { %3700 = vmatprep.subr.bf16.mxu0 %v4200_v29  ;;  %3864 = vmatprep.subr.bf16.mxu1 %v4202_v31  ;;  %v4258_v29 = vcombine.high %v404_v27, %v408_v40  ;;  %v411_v31 = vld [vmem:[#allocation7 + $0x610] sm:$0xff]  ;;  %v460_v24 = vld [vmem:[#allocation7 + $0x798] sm:$0xff] }
 0x187   :  { %3692 = vmatmul.mubr.bf16.vlgmr.msra.gmra.mrb[4].mxu0 %v4948_v57  ;;  %3856 = vmatmul.mubr.bf16.vlgmr.msra.gmra.mrb[4].mxu1 %v4948_v57  ;;  %v4217_v57 = vcombine.low %v364_v43, %v368_v46  ;;  %v424_v43 = vld [vmem:[#allocation7 + $0x678] sm:$0xff]  ;;  %v4263_v46 = vcombine.low %v411_v31, %v415_v35 }
 0x188   :  { %3701 = vmatpush1.bf16.msra.mxu0 %v4199_v37  ;;  %3865 = vmatpush1.bf16.msra.mxu1 %v4201_v38  ;;  %v4257_v37 = vcombine.low %v404_v27, %v408_v40  ;;  %v4264_v38 = vcombine.high %v411_v31, %v415_v35  ;;  %v464_v27 = vld [vmem:[#allocation7 + $0x7b8] sm:$0xff]  ;;  %v471_v31 = vld [vmem:[#allocation7 + $0x7f0] sm:$0xff] }
 0x189   :  { %3702 = vmatprep.subr.bf16.mxu0 %v4208_v9  ;;  %3866 = vmatprep.subr.bf16.mxu1 %v4210_v55  ;;  %v4266_v9 = vcombine.high %v412_v44, %v416_v36  ;;  %v419_v55 = vld [vmem:[#allocation7 + $0x650] sm:$0xff]  ;;  %v468_v35 = vld [vmem:[#allocation7 + $0x7d8] sm:$0xff] }
 0x18a   :  { %3732 = vmatprep.mubr.bf16.mxu0 %v4958_v0  ;;  %3896 = vmatprep.mubr.bf16.mxu1 %v4958_v0  ;;  %v4234_v0 = vcombine.high %v380_v3, %v384_v4  ;;  %v4271_v56 = vcombine.low %v419_v55, %v423_v32  ;;  %v440_v3 = vld [vmem:[#allocation7 + $0x6f8] sm:$0xff] }
 0x18c   :  { %3703 = vmatpush1.bf16.msra.mxu0 %v4207_v51  ;;  %3867 = vmatpush1.bf16.msra.mxu1 %v4209_v59  ;;  %v4265_v51 = vcombine.low %v412_v44, %v416_v36  ;;  %v4272_v59 = vcombine.high %v419_v55, %v423_v32  ;;  %v472_v44 = vld [vmem:[#allocation7 + $0x7f8] sm:$0xff]  ;;  %v479_v55 = vld [vmem:[#allocation7 + $0x830] sm:$0xff] }
 0x18d   :  { %3704 = vmatprep.subr.bf16.mxu0 %v4216_v47  ;;  %3868 = vmatprep.subr.bf16.mxu1 %v4218_v48  ;;  %v4274_v47 = vcombine.high %v420_v41, %v424_v43  ;;  %v427_v48 = vld [vmem:[#allocation7 + $0x690] sm:$0xff]  ;;  %v476_v32 = vld [vmem:[#allocation7 + $0x818] sm:$0xff] }
 0x18e   :  { %v4279_v4 = vcombine.low %v427_v48, %v431_v62 }
 0x190   :  { %3705 = vmatpush1.bf16.msra.mxu0 %v4215_v53  ;;  %3869 = vmatpush1.bf16.msra.mxu1 %v4217_v57  ;;  %v4273_v53 = vcombine.low %v420_v41, %v424_v43  ;;  %v4280_v57 = vcombine.high %v427_v48, %v431_v62  ;;  %v480_v41 = vld [vmem:[#allocation7 + $0x838] sm:$0xff]  ;;  %v487_v48 = vld [vmem:[#allocation7 + $0x870] sm:$0xff] }
 0x191   :  { %3706 = vmatprep.subr.bf16.mxu0 %v4224_v60  ;;  %3870 = vmatprep.subr.bf16.mxu1 %v4226_v61  ;;  %v4282_v60 = vcombine.high %v428_v49, %v432_v50  ;;  %v435_v61 = vld [vmem:[#allocation7 + $0x6d0] sm:$0xff]  ;;  %v484_v62 = vld [vmem:[#allocation7 + $0x858] sm:$0xff] }
 0x192   :  { %v4287_v12 = vcombine.low %v435_v61, %v439_v2 }
 0x194   :  { %3707 = vmatpush1.bf16.msra.mxu0 %v4223_v63  ;;  %3871 = vmatpush1.bf16.msra.mxu1 %v4225_v5  ;;  %v4281_v63 = vcombine.low %v428_v49, %v432_v50  ;;  %v4288_v5 = vcombine.high %v435_v61, %v439_v2  ;;  %v488_v49 = vld [vmem:[#allocation7 + $0x878] sm:$0xff]  ;;  %v495_v61 = vld [vmem:[#allocation7 + $0x8b0] sm:$0xff] }
 0x195   :  { %3708 = vmatprep.subr.bf16.mxu0 %v4232_v21  ;;  %3872 = vmatprep.subr.bf16.mxu1 %v4234_v0  ;;  %v4290_v21 = vcombine.high %v436_v42, %v440_v3  ;;  %v443_v0 = vld [vmem:[#allocation7 + $0x710] sm:$0xff]  ;;  %v492_v2 = vld [vmem:[#allocation7 + $0x898] sm:$0xff] }
 0x196   :  { %v4295_v6 = vcombine.low %v443_v0, %v447_v1 }
 0x198   :  { %3709 = vmatpush1.bf16.msra.mxu0 %v4231_v13  ;;  %3873 = vmatpush1.bf16.msra.mxu1 %v4233_v7  ;;  %v4289_v13 = vcombine.low %v436_v42, %v440_v3  ;;  %v4296_v7 = vcombine.high %v443_v0, %v447_v1  ;;  %v496_v42 = vld [vmem:[#allocation7 + $0x8b8] sm:$0xff]  ;;  %v503_v0 = vld [vmem:[#allocation7 + $0x8f0] sm:$0xff] }
 0x199   :  { %3710 = vmatprep.subr.bf16.mxu0 %v4240_v16  ;;  %3874 = vmatprep.subr.bf16.mxu1 %v4242_v14  ;;  %v4298_v16 = vcombine.high %v444_v8, %v448_v11  ;;  %v451_v14 = vld [vmem:[#allocation7 + $0x750] sm:$0xff]  ;;  %v500_v1 = vld [vmem:[#allocation7 + $0x8d8] sm:$0xff] }
 0x19a   :  { %v4303_v40 = vcombine.low %v451_v14, %v455_v26 }
 0x19c   :  { %3711 = vmatpush1.bf16.msra.mxu0 %v4239_v20  ;;  %3875 = vmatpush1.bf16.msra.mxu1 %v4241_v22  ;;  %v4297_v20 = vcombine.low %v444_v8, %v448_v11  ;;  %v4304_v22 = vcombine.high %v451_v14, %v455_v26  ;;  %v504_v8 = vld [vmem:[#allocation7 + $0x8f8] sm:$0xff] }
 0x19d   :  { %3712 = vmatprep.subr.bf16.mxu0 %v4248_v15  ;;  %3876 = vmatprep.subr.bf16.mxu1 %v4250_v34  ;;  %v4306_v15 = vcombine.high %v452_v18, %v456_v19  ;;  %v459_v34 = vld [vmem:[#allocation7 + $0x790] sm:$0xff]  ;;  %v508_v14 = vld [vmem:[#allocation7 + $0x918] sm:$0xff] }
 0x19e   :  { %v4311_v36 = vcombine.low %v459_v34, %v463_v23  ;;  %v512_v26 = vld [vmem:[#allocation7 + $0x938] sm:$0xff] }
 0x1a0   :  { %3713 = vmatpush1.bf16.msra.mxu0 %v4247_v25  ;;  %3877 = vmatpush1.bf16.msra.mxu1 %v4249_v33  ;;  %v4305_v25 = vcombine.low %v452_v18, %v456_v19  ;;  %v4312_v33 = vcombine.high %v459_v34, %v463_v23  ;;  %v4353_v19 = vcombine.low %v500_v1, %v504_v8  ;;  %v520_v34 = vld [vmem:[#allocation7 + $0x978] sm:$0xff] }
 0x1a1   :  { %3714 = vmatprep.subr.bf16.mxu0 %v4256_v45  ;;  %3878 = vmatprep.subr.bf16.mxu1 %v4258_v29  ;;  %v4314_v45 = vcombine.high %v460_v24, %v464_v27  ;;  %v467_v29 = vld [vmem:[#allocation7 + $0x7d0] sm:$0xff] }
 0x1a2   :  { %v4319_v43 = vcombine.low %v467_v29, %v471_v31 }
 0x1a4   :  { %3715 = vmatpush1.bf16.msra.mxu0 %v4255_v54  ;;  %3879 = vmatpush1.bf16.msra.mxu1 %v4257_v37  ;;  %v4313_v54 = vcombine.low %v460_v24, %v464_v27  ;;  %v4320_v37 = vcombine.high %v467_v29, %v471_v31  ;;  %v4361_v24 = vcombine.low %v508_v14, %v512_v26  ;;  %v528_v29 = vld [vmem:[#allocation7 + $0x9b8] sm:$0xff] }
 0x1a5   :  { %3716 = vmatprep.subr.bf16.mxu0 %v4264_v38  ;;  %3880 = vmatprep.subr.bf16.mxu1 %v4266_v9  ;;  %v4322_v38 = vcombine.high %v468_v35, %v472_v44  ;;  %v475_v9 = vld [vmem:[#allocation7 + $0x810] sm:$0xff] }
 0x1a6   :  { %v4327_v50 = vcombine.low %v475_v9, %v479_v55 }
 0x1a8   :  { %3717 = vmatpush1.bf16.msra.mxu0 %v4263_v46  ;;  %3881 = vmatpush1.bf16.msra.mxu1 %v4265_v51  ;;  %v4321_v46 = vcombine.low %v468_v35, %v472_v44  ;;  %v4328_v51 = vcombine.high %v475_v9, %v479_v55  ;;  %v536_v9 = vld [vmem:[#allocation7 + $0x9f8] sm:$0xff] }
 0x1a9   :  { %3718 = vmatprep.subr.bf16.mxu0 %v4272_v59  ;;  %3882 = vmatprep.subr.bf16.mxu1 %v4274_v47  ;;  %v4330_v59 = vcombine.high %v476_v32, %v480_v41  ;;  %v483_v47 = vld [vmem:[#allocation7 + $0x850] sm:$0xff] }
 0x1aa   :  { %v4335_v3 = vcombine.low %v483_v47, %v487_v48 }
 0x1ac   :  { %3719 = vmatpush1.bf16.msra.mxu0 %v4271_v56  ;;  %3883 = vmatpush1.bf16.msra.mxu1 %v4273_v53  ;;  %v4329_v56 = vcombine.low %v476_v32, %v480_v41  ;;  %v4336_v53 = vcombine.high %v483_v47, %v487_v48  ;;  %v544_v47 = vld [vmem:[#allocation7 + $0xa38] sm:$0xff] }
 0x1ad   :  { %3720 = vmatprep.subr.bf16.mxu0 %v4280_v57  ;;  %3884 = vmatprep.subr.bf16.mxu1 %v4282_v60  ;;  %v4338_v57 = vcombine.high %v484_v62, %v488_v49  ;;  %v491_v60 = vld [vmem:[#allocation7 + $0x890] sm:$0xff] }
 0x1ae   :  { %v4343_v11 = vcombine.low %v491_v60, %v495_v61 }
 0x1b0   :  { %3721 = vmatpush1.bf16.msra.mxu0 %v4279_v4  ;;  %3885 = vmatpush1.bf16.msra.mxu1 %v4281_v63  ;;  %v4337_v4 = vcombine.low %v484_v62, %v488_v49  ;;  %v4344_v63 = vcombine.high %v491_v60, %v495_v61  ;;  %v552_v60 = vld [vmem:[#allocation7 + $0xa78] sm:$0xff] }
 0x1b1   :  { %3722 = vmatprep.subr.bf16.mxu0 %v4288_v5  ;;  %3886 = vmatprep.subr.bf16.mxu1 %v4290_v21  ;;  %v4346_v5 = vcombine.high %v492_v2, %v496_v42  ;;  %v499_v21 = vld [vmem:[#allocation7 + $0x8d0] sm:$0xff] }
 0x1b2   :  { %v4351_v18 = vcombine.low %v499_v21, %v503_v0 }
 0x1b4   :  { %3723 = vmatpush1.bf16.msra.mxu0 %v4287_v12  ;;  %3887 = vmatpush1.bf16.msra.mxu1 %v4289_v13  ;;  %v4352_v12 = vcombine.high %v499_v21, %v503_v0  ;;  %v4354_v13 = vcombine.high %v500_v1, %v504_v8  ;;  %v560_v21 = vld [vmem:[#allocation7 + $0xab8] sm:$0xff] }
 0x1b5   :  { %3724 = vmatprep.subr.bf16.mxu0 %v4296_v7  ;;  %3888 = vmatprep.subr.bf16.mxu1 %v4298_v16  ;;  %v507_v7 = vld [vmem:[#allocation7 + $0x910] sm:$0xff] }
 0x1b6   :  { %v511_v16 = vld [vmem:[#allocation7 + $0x930] sm:$0xff] }
 0x1b7   :  { %v4359_v23 = vcombine.low %v507_v7, %v511_v16 }
 0x1b8   :  { %3725 = vmatpush1.bf16.msra.mxu0 %v4295_v6  ;;  %3889 = vmatpush1.bf16.msra.mxu1 %v4297_v20  ;;  %v4360_v6 = vcombine.high %v507_v7, %v511_v16  ;;  %v515_v20 = vld [vmem:[#allocation7 + $0x950] sm:$0xff]  ;;  %v568_v7 = vld [vmem:[#allocation7 + $0xaf8] sm:$0xff] }
 0x1b9   :  { %3726 = vmatprep.subr.bf16.mxu0 %v4304_v22  ;;  %3890 = vmatprep.subr.bf16.mxu1 %v4306_v15  ;;  %v519_v22 = vld [vmem:[#allocation7 + $0x970] sm:$0xff]  ;;  %v516_v15 = vld [vmem:[#allocation7 + $0x958] sm:$0xff] }
 0x1ba   :  { %v4368_v27 = vcombine.high %v515_v20, %v519_v22  ;;  %v4367_v31 = vcombine.low %v515_v20, %v519_v22  ;;  %v4369_v35 = vcombine.low %v516_v15, %v520_v34  ;;  %v576_v20 = vld [vmem:[#allocation7 + $0xb38] sm:$0xff] }
 0x1bc   :  { %3727 = vmatpush1.bf16.msra.mxu0 %v4303_v40  ;;  %3891 = vmatpush1.bf16.msra.mxu1 %v4305_v25  ;;  %v4370_v40 = vcombine.high %v516_v15, %v520_v34  ;;  %v523_v25 = vld [vmem:[#allocation7 + $0x990] sm:$0xff] }
 0x1bd   :  { %3728 = vmatprep.subr.bf16.mxu0 %v4312_v33  ;;  %3892 = vmatprep.subr.bf16.mxu1 %v4314_v45  ;;  %v527_v33 = vld [vmem:[#allocation7 + $0x9b0] sm:$0xff]  ;;  %v524_v45 = vld [vmem:[#allocation7 + $0x998] sm:$0xff] }
 0x1be   :  { %v4376_v44 = vcombine.high %v523_v25, %v527_v33  ;;  %v4375_v55 = vcombine.low %v523_v25, %v527_v33  ;;  %v4377_v32 = vcombine.low %v524_v45, %v528_v29  ;;  %v584_v25 = vld [vmem:[#allocation7 + $0xb78] sm:$0xff] }
 0x1c0   :  { %3729 = vmatpush1.bf16.msra.mxu0 %v4311_v36  ;;  %3893 = vmatpush1.bf16.msra.mxu1 %v4313_v54  ;;  %v4378_v36 = vcombine.high %v524_v45, %v528_v29  ;;  %v531_v54 = vld [vmem:[#allocation7 + $0x9d0] sm:$0xff] }
 0x1c1   :  { %3730 = vmatprep.subr.bf16.mxu0 %v4320_v37  ;;  %3894 = vmatprep.subr.bf16.mxu1 %v4322_v38  ;;  %v535_v37 = vld [vmem:[#allocation7 + $0x9f0] sm:$0xff]  ;;  %v532_v38 = vld [vmem:[#allocation7 + $0x9d8] sm:$0xff] }
 0x1c2   :  { %v4384_v41 = vcombine.high %v531_v54, %v535_v37  ;;  %v4383_v48 = vcombine.low %v531_v54, %v535_v37  ;;  %v4385_v62 = vcombine.low %v532_v38, %v536_v9  ;;  %v592_v54 = vld [vmem:[#allocation7 + $0xbb8] sm:$0xff] }
 0x1c4   :  { %3731 = vmatpush1.bf16.msra.mxu0 %v4319_v43  ;;  %3895 = vmatpush1.bf16.msra.mxu1 %v4321_v46  ;;  %v4386_v43 = vcombine.high %v532_v38, %v536_v9  ;;  %v539_v46 = vld [vmem:[#allocation7 + $0xa10] sm:$0xff] }
 0x1c5   :  { %3741 = vmatprep.subr.bf16.mxu0 %v4328_v51  ;;  %3905 = vmatprep.subr.bf16.mxu1 %v4330_v59  ;;  %v543_v51 = vld [vmem:[#allocation7 + $0xa30] sm:$0xff]  ;;  %v540_v59 = vld [vmem:[#allocation7 + $0xa18] sm:$0xff] }
 0x1c6   :  { %v4392_v49 = vcombine.high %v539_v46, %v543_v51  ;;  %v4391_v61 = vcombine.low %v539_v46, %v543_v51  ;;  %v600_v46 = vld [vmem:[#allocation7 + $0xbf8] sm:$0xff] }
 0x1c7   :  { %3733 = vmatmul.mubr.bf16.vlgmr.msra.gmra.mrb[4].mxu0 %v4991_v28  ;;  %3897 = vmatmul.mubr.bf16.vlgmr.msra.gmra.mrb[4].mxu1 %v4991_v28  ;;  %v4345_v28 = vcombine.low %v492_v2, %v496_v42  ;;  %v4393_v2 = vcombine.low %v540_v59, %v544_v47 }
 0x1c8   :  { %3742 = vmatpush1.bf16.msra.mxu0 %v4327_v50  ;;  %3906 = vmatpush1.bf16.msra.mxu1 %v4329_v56  ;;  %v4394_v50 = vcombine.high %v540_v59, %v544_v47  ;;  %v547_v56 = vld [vmem:[#allocation7 + $0xa50] sm:$0xff] }
 0x1c9   :  { %3743 = vmatprep.subr.bf16.mxu0 %v4336_v53  ;;  %3907 = vmatprep.subr.bf16.mxu1 %v4338_v57  ;;  %v551_v53 = vld [vmem:[#allocation7 + $0xa70] sm:$0xff]  ;;  %v548_v57 = vld [vmem:[#allocation7 + $0xa58] sm:$0xff] }
 0x1ca   :  { %3773 = vmatprep.mubr.bf16.mxu0 %v4993_v39  ;;  %3937 = vmatprep.mubr.bf16.mxu1 %v4993_v39  ;;  %v4362_v39 = vcombine.high %v508_v14, %v512_v26  ;;  %v4400_v42 = vcombine.high %v547_v56, %v551_v53  ;;  %v4399_v0 = vcombine.low %v547_v56, %v551_v53  ;;  %v608_v56 = vld [vmem:[#allocation7 + $0xc38] sm:$0xff] }
 0x1cb   :  { %v4401_v1 = vcombine.low %v548_v57, %v552_v60 }
 0x1cc   :  { %3744 = vmatpush1.bf16.msra.mxu0 %v4335_v3  ;;  %3908 = vmatpush1.bf16.msra.mxu1 %v4337_v4  ;;  %v4402_v3 = vcombine.high %v548_v57, %v552_v60  ;;  %v555_v4 = vld [vmem:[#allocation7 + $0xa90] sm:$0xff] }
 0x1cd   :  { %3745 = vmatprep.subr.bf16.mxu0 %v4344_v63  ;;  %3909 = vmatprep.subr.bf16.mxu1 %v4346_v5  ;;  %v559_v63 = vld [vmem:[#allocation7 + $0xab0] sm:$0xff]  ;;  %v556_v5 = vld [vmem:[#allocation7 + $0xa98] sm:$0xff] }
 0x1ce   :  { %v4408_v8 = vcombine.high %v555_v4, %v559_v63  ;;  %v4407_v16 = vcombine.low %v555_v4, %v559_v63  ;;  %v4409_v14 = vcombine.low %v556_v5, %v560_v21  ;;  %v616_v4 = vld [vmem:[#allocation7 + $0xc78] sm:$0xff] }
 0x1d0   :  { %3746 = vmatpush1.bf16.msra.mxu0 %v4343_v11  ;;  %3910 = vmatpush1.bf16.msra.mxu1 %v4345_v28  ;;  %v4410_v11 = vcombine.high %v556_v5, %v560_v21  ;;  %v563_v28 = vld [vmem:[#allocation7 + $0xad0] sm:$0xff] }
 0x1d1   :  { %3747 = vmatprep.subr.bf16.mxu0 %v4352_v12  ;;  %3911 = vmatprep.subr.bf16.mxu1 %v4354_v13  ;;  %v567_v12 = vld [vmem:[#allocation7 + $0xaf0] sm:$0xff]  ;;  %v564_v13 = vld [vmem:[#allocation7 + $0xad8] sm:$0xff] }
 0x1d2   :  { %v4416_v26 = vcombine.high %v563_v28, %v567_v12  ;;  %v4415_v22 = vcombine.low %v563_v28, %v567_v12  ;;  %v4417_v15 = vcombine.low %v564_v13, %v568_v7  ;;  %v624_v28 = vld [vmem:[#allocation7 + $0xcb8] sm:$0xff] }
 0x1d4   :  { %3748 = vmatpush1.bf16.msra.mxu0 %v4351_v18  ;;  %3912 = vmatpush1.bf16.msra.mxu1 %v4353_v19  ;;  %v4418_v18 = vcombine.high %v564_v13, %v568_v7  ;;  %v571_v19 = vld [vmem:[#allocation7 + $0xb10] sm:$0xff] }
 0x1d5   :  { %3749 = vmatprep.subr.bf16.mxu0 %v4360_v6  ;;  %3913 = vmatprep.subr.bf16.mxu1 %v4362_v39  ;;  %v575_v6 = vld [vmem:[#allocation7 + $0xb30] sm:$0xff]  ;;  %v572_v39 = vld [vmem:[#allocation7 + $0xb18] sm:$0xff] }
 0x1d6   :  { %v4424_v34 = vcombine.high %v571_v19, %v575_v6  ;;  %v4423_v33 = vcombine.low %v571_v19, %v575_v6  ;;  %v4425_v45 = vcombine.low %v572_v39, %v576_v20  ;;  %v632_v19 = vld [vmem:[#allocation7 + $0xcf8] sm:$0xff] }
 0x1d8   :  { %3750 = vmatpush1.bf16.msra.mxu0 %v4359_v23  ;;  %3914 = vmatpush1.bf16.msra.mxu1 %v4361_v24  ;;  %v4426_v23 = vcombine.high %v572_v39, %v576_v20  ;;  %v579_v24 = vld [vmem:[#allocation7 + $0xb50] sm:$0xff] }
 0x1d9   :  { %3751 = vmatprep.subr.bf16.mxu0 %v4368_v27  ;;  %3915 = vmatprep.subr.bf16.mxu1 %v4370_v40  ;;  %v583_v27 = vld [vmem:[#allocation7 + $0xb70] sm:$0xff]  ;;  %v580_v40 = vld [vmem:[#allocation7 + $0xb58] sm:$0xff] }
 0x1da   :  { %v4432_v29 = vcombine.high %v579_v24, %v583_v27  ;;  %v4431_v37 = vcombine.low %v579_v24, %v583_v27  ;;  %v4433_v38 = vcombine.low %v580_v40, %v584_v25 }
 0x1dc   :  { %3752 = vmatpush1.bf16.msra.mxu0 %v4367_v31  ;;  %3916 = vmatpush1.bf16.msra.mxu1 %v4369_v35  ;;  %v4434_v31 = vcombine.high %v580_v40, %v584_v25  ;;  %v587_v35 = vld [vmem:[#allocation7 + $0xb90] sm:$0xff] }
 0x1dd   :  { %3753 = vmatprep.subr.bf16.mxu0 %v4376_v44  ;;  %3917 = vmatprep.subr.bf16.mxu1 %v4378_v36  ;;  %v591_v44 = vld [vmem:[#allocation7 + $0xbb0] sm:$0xff]  ;;  %v588_v36 = vld [vmem:[#allocation7 + $0xb98] sm:$0xff] }
 0x1de   :  { %v4440_v9 = vcombine.high %v587_v35, %v591_v44  ;;  %v4439_v51 = vcombine.low %v587_v35, %v591_v44  ;;  %v4441_v59 = vcombine.low %v588_v36, %v592_v54  ;;  %v643_v25 = vld [vmem:[#allocation7 + $0xd50] sm:$0xff]  ;;  %v5037_v44 = vld [vmem:[#allocation9] sm:$0xff] }
 0x1e0   :  { %3754 = vmatpush1.bf16.msra.mxu0 %v4375_v55  ;;  %3918 = vmatpush1.bf16.msra.mxu1 %v4377_v32  ;;  %v4442_v55 = vcombine.high %v588_v36, %v592_v54  ;;  %v595_v32 = vld [vmem:[#allocation7 + $0xbd0] sm:$0xff]  ;;  %v741_v36 = vsub.s32 2, %v4918_v10  ;;  %v737_v54 = vsub.s32 1, %v4918_v10 }
 0x1e1   :  { %3755 = vmatprep.subr.bf16.mxu0 %v4384_v41  ;;  %3919 = vmatprep.subr.bf16.mxu1 %v4386_v43  ;;  %v599_v41 = vld [vmem:[#allocation7 + $0xbf0] sm:$0xff]  ;;  %v596_v43 = vld [vmem:[#allocation7 + $0xbd8] sm:$0xff] }
 0x1e2   :  { %v4448_v47 = vcombine.high %v595_v32, %v599_v41  ;;  %v4447_v53 = vcombine.low %v595_v32, %v599_v41  ;;  %v4449_v57 = vcombine.low %v596_v43, %v600_v46  ;;  %v651_v32 = vld [vmem:[#allocation7 + $0xd90] sm:$0xff] }
 0x1e3   :  { %v655_v41 = vld [vmem:[#allocation7 + $0xdb0] sm:$0xff] }
 0x1e4   :  { %3756 = vmatpush1.bf16.msra.mxu0 %v4383_v48  ;;  %3920 = vmatpush1.bf16.msra.mxu1 %v4385_v62  ;;  %v4450_v48 = vcombine.high %v596_v43, %v600_v46  ;;  %v603_v62 = vld [vmem:[#allocation7 + $0xc10] sm:$0xff]  ;;  %v652_v46 = vld [vmem:[#allocation7 + $0xd98] sm:$0xff] }
 0x1e5   :  { %3757 = vmatprep.subr.bf16.mxu0 %v4392_v49  ;;  %3921 = vmatprep.subr.bf16.mxu1 %v4394_v50  ;;  %v607_v49 = vld [vmem:[#allocation7 + $0xc30] sm:$0xff]  ;;  %v604_v50 = vld [vmem:[#allocation7 + $0xc18] sm:$0xff] }
 0x1e6   :  { %v4456_v60 = vcombine.high %v603_v62, %v607_v49  ;;  %v4455_v63 = vcombine.low %v603_v62, %v607_v49  ;;  %v4457_v5 = vcombine.low %v604_v50, %v608_v56 }
 0x1e8   :  { %3758 = vmatpush1.bf16.msra.mxu0 %v4391_v61  ;;  %3922 = vmatpush1.bf16.msra.mxu1 %v4393_v2  ;;  %v4458_v61 = vcombine.high %v604_v50, %v608_v56  ;;  %v611_v2 = vld [vmem:[#allocation7 + $0xc50] sm:$0xff]  ;;  %v4504_v50 = vcombine.high %v651_v32, %v655_v41 }
 0x1e9   :  { %3759 = vmatprep.subr.bf16.mxu0 %v4400_v42  ;;  %3923 = vmatprep.subr.bf16.mxu1 %v4402_v3  ;;  %v615_v42 = vld [vmem:[#allocation7 + $0xc70] sm:$0xff]  ;;  %v612_v3 = vld [vmem:[#allocation7 + $0xc58] sm:$0xff] }
 0x1ea   :  { %v4464_v21 = vcombine.high %v611_v2, %v615_v42  ;;  %v4463_v12 = vcombine.low %v611_v2, %v615_v42  ;;  %v4465_v13 = vcombine.low %v612_v3, %v616_v4 }
 0x1ec   :  { %3760 = vmatpush1.bf16.msra.mxu0 %v4399_v0  ;;  %3924 = vmatpush1.bf16.msra.mxu1 %v4401_v1  ;;  %v4466_v0 = vcombine.high %v612_v3, %v616_v4  ;;  %v619_v1 = vld [vmem:[#allocation7 + $0xc90] sm:$0xff]  ;;  %v660_v3 = vld [vmem:[#allocation7 + $0xdd8] sm:$0xff] }
 0x1ed   :  { %3761 = vmatprep.subr.bf16.mxu0 %v4408_v8  ;;  %3925 = vmatprep.subr.bf16.mxu1 %v4410_v11  ;;  %v623_v8 = vld [vmem:[#allocation7 + $0xcb0] sm:$0xff]  ;;  %v620_v11 = vld [vmem:[#allocation7 + $0xc98] sm:$0xff] }
 0x1ee   :  { %v4472_v7 = vcombine.high %v619_v1, %v623_v8  ;;  %v4471_v6 = vcombine.low %v619_v1, %v623_v8  ;;  %v664_v4 = vld [vmem:[#allocation7 + $0xdf8] sm:$0xff]  ;;  %v4503_v1 = vcombine.low %v651_v32, %v655_v41 }
 0x1ef   :  { %v688_v32 = vld [vmem:[#allocation7 + $0xeb8] sm:$0xff] }
 0x1f0   :  { %3762 = vmatpush1.bf16.msra.mxu0 %v4407_v16  ;;  %3926 = vmatpush1.bf16.msra.mxu1 %v4409_v14  ;;  %v4474_v16 = vcombine.high %v620_v11, %v624_v28  ;;  %v627_v14 = vld [vmem:[#allocation7 + $0xcd0] sm:$0xff] }
 0x1f1   :  { %3763 = vmatprep.subr.bf16.mxu0 %v4416_v26  ;;  %3927 = vmatprep.subr.bf16.mxu1 %v4418_v18  ;;  %v631_v26 = vld [vmem:[#allocation7 + $0xcf0] sm:$0xff]  ;;  %v628_v18 = vld [vmem:[#allocation7 + $0xcd8] sm:$0xff] }
 0x1f2   :  { %v4480_v39 = vcombine.high %v627_v14, %v631_v26  ;;  %v4482_v20 = vcombine.high %v628_v18, %v632_v19  ;;  %v4479_v24 = vcombine.low %v627_v14, %v631_v26  ;;  %v4481_v27 = vcombine.low %v628_v18, %v632_v19  ;;  %v667_v19 = vld [vmem:[#allocation7 + $0xe10] sm:$0xff] }
 0x1f3   :  { %v4514_v18 = vcombine.high %v660_v3, %v664_v4 }
 0x1f4   :  { %3764 = vmatpush1.bf16.msra.mxu0 %v4415_v22  ;;  %3928 = vmatpush1.bf16.msra.mxu1 %v4417_v15  ;;  %v635_v22 = vld [vmem:[#allocation7 + $0xd10] sm:$0xff] }
 0x1f5   :  { %3765 = vmatprep.subr.bf16.mxu0 %v4424_v34  ;;  %3929 = vmatprep.subr.bf16.mxu1 %v4426_v23  ;;  %v639_v15 = vld [vmem:[#allocation7 + $0xd30] sm:$0xff]  ;;  %v636_v34 = vld [vmem:[#allocation7 + $0xd18] sm:$0xff] }
 0x1f6   :  { %v640_v23 = vld [vmem:[#allocation7 + $0xd38] sm:$0xff]  ;;  %v4488_v40 = vcombine.high %v635_v22, %v639_v15  ;;  %v4487_v35 = vcombine.low %v635_v22, %v639_v15 }
 0x1f8   :  { %3766 = vmatpush1.bf16.msra.mxu0 %v4423_v33  ;;  %3930 = vmatpush1.bf16.msra.mxu1 %v4425_v45  ;;  %v647_v33 = vld [vmem:[#allocation7 + $0xd70] sm:$0xff]  ;;  %v733_v45 = vsub.s32 0, %v4918_v10 }
 0x1f9   :  { %3767 = vmatprep.subr.bf16.mxu0 %v4432_v29  ;;  %3931 = vmatprep.subr.bf16.mxu1 %v4434_v31  ;;  %v644_v29 = vld [vmem:[#allocation7 + $0xd58] sm:$0xff] }
 0x1fa   :  { %v648_v31 = vld [vmem:[#allocation7 + $0xd78] sm:$0xff]  ;;  %v734_v43 = vrot.slane %v5037_v44, %v733_v45 }
 0x1fb   :  { %v4497_v49 = vcombine.low %v644_v29, %v648_v31  ;;  %v680_v45 = vld [vmem:[#allocation7 + $0xe78] sm:$0xff] }
 0x1fc   :  { %3768 = vmatpush1.bf16.msra.mxu0 %v4431_v37  ;;  %3932 = vmatpush1.bf16.msra.mxu1 %v4433_v38  ;;  %v4489_v37 = vcombine.low %v636_v34, %v640_v23  ;;  %v745_v38 = vsub.s32 3, %v4918_v10 }
 0x1fd   :  { %3769 = vmatprep.subr.bf16.mxu0 %v4440_v9  ;;  %3933 = vmatprep.subr.bf16.mxu1 %v4442_v55  ;;  %v4496_v9 = vcombine.high %v643_v25, %v647_v33  ;;  %v4498_v55 = vcombine.high %v644_v29, %v648_v31 }
 0x1fe   :  { %v746_v62 = vrot.slane %v5037_v44, %v745_v38  ;;  %v683_v38 = vld [vmem:[#allocation7 + $0xe90] sm:$0xff] }
 0x200   :  { %3770 = vmatpush1.bf16.msra.mxu0 %v4439_v51  ;;  %3934 = vmatpush1.bf16.msra.mxu1 %v4441_v59  ;;  %v656_v51 = vld [vmem:[#allocation7 + $0xdb8] sm:$0xff]  ;;  %v742_v59 = vrot.slane %v5037_v44, %v741_v36 }
 0x201   :  { %3771 = vmatprep.subr.bf16.mxu0 %v4448_v47  ;;  %3935 = vmatprep.subr.bf16.mxu1 %v4450_v48  ;;  %v738_v47 = vrot.slane %v5037_v44, %v737_v54  ;;  %v4495_v48 = vcombine.low %v643_v25, %v647_v33  ;;  %v676_v33 = vld [vmem:[#allocation7 + $0xe58] sm:$0xff] }
 0x204   :  { %3772 = vmatpush1.bf16.msra.mxu0 %v4447_v53  ;;  %3936 = vmatpush1.bf16.msra.mxu1 %v4449_v57  ;;  %v4506_v53 = vcombine.high %v652_v46, %v656_v51  ;;  %v659_v57 = vld [vmem:[#allocation7 + $0xdd0] sm:$0xff] }
 0x205   :  { %3782 = vmatprep.subr.bf16.mxu0 %v4456_v60  ;;  %3946 = vmatprep.subr.bf16.mxu1 %v4458_v61  ;;  %v663_v60 = vld [vmem:[#allocation7 + $0xdf0] sm:$0xff] }
 0x206   :  { %v4511_v15 = vcombine.low %v659_v57, %v663_v60 }
 0x207   :  { %3774 = vmatmul.mubr.bf16.vlgmr.msra.gmra.mrb[4].mxu0 %v5008_v52  ;;  %3938 = vmatmul.mubr.bf16.vlgmr.msra.gmra.mrb[4].mxu1 %v5008_v52  ;;  %v4473_v52 = vcombine.low %v620_v11, %v624_v28 }
 0x208   :  { %3783 = vmatpush1.bf16.msra.mxu0 %v4455_v63  ;;  %3947 = vmatpush1.bf16.msra.mxu1 %v4457_v5 }
 0x209   :  { %3784 = vmatprep.subr.bf16.mxu0 %v4464_v21  ;;  %3948 = vmatprep.subr.bf16.mxu1 %v4466_v0 }
 0x20a   :  { %3814 = vmatprep.mubr.bf16.mxu0 %v5010_v58  ;;  %3978 = vmatprep.mubr.bf16.mxu1 %v5010_v58  ;;  %v4490_v58 = vcombine.high %v636_v34, %v640_v23  ;;  %v4513_v23 = vcombine.low %v660_v3, %v664_v4 }
 0x20c   :  { %3785 = vmatpush1.bf16.msra.mxu0 %v4463_v12  ;;  %3949 = vmatpush1.bf16.msra.mxu1 %v4465_v13  ;;  %v4505_v13 = vcombine.low %v652_v46, %v656_v51 }
 0x20d   :  { %3786 = vmatprep.subr.bf16.mxu0 %v4472_v7  ;;  %3950 = vmatprep.subr.bf16.mxu1 %v4474_v16  ;;  %v4512_v7 = vcombine.high %v659_v57, %v663_v60  ;;  %v699_v57 = vld [vmem:[#allocation7 + $0xf10] sm:$0xff] }
 0x20e   :  { %v703_v60 = vld [vmem:[#allocation7 + $0xf30] sm:$0xff] }
 0x20f   :  { %v4552_v4 = vcombine.high %v699_v57, %v703_v60 }
 0x210   :  { %3787 = vmatpush1.bf16.msra.mxu0 %v4471_v6  ;;  %3951 = vmatpush1.bf16.msra.mxu1 %v4473_v52  ;;  %v671_v6 = vld [vmem:[#allocation7 + $0xe30] sm:$0xff] }
 0x211   :  { %3788 = vmatprep.subr.bf16.mxu0 %v4480_v39  ;;  %3952 = vmatprep.subr.bf16.mxu1 %v4482_v20  ;;  %v668_v39 = vld [vmem:[#allocation7 + $0xe18] sm:$0xff]  ;;  %v4519_v31 = vcombine.low %v667_v19, %v671_v6 }
 0x212   :  { %v672_v20 = vld [vmem:[#allocation7 + $0xe38] sm:$0xff] }
 0x214   :  { %3789 = vmatpush1.bf16.msra.mxu0 %v4479_v24  ;;  %3953 = vmatpush1.bf16.msra.mxu1 %v4481_v27  ;;  %v4520_v24 = vcombine.high %v667_v19, %v671_v6  ;;  %v4522_v27 = vcombine.high %v668_v39, %v672_v20 }
 0x215   :  { %3790 = vmatprep.subr.bf16.mxu0 %v4488_v40  ;;  %3954 = vmatprep.subr.bf16.mxu1 %v4490_v58  ;;  %v675_v40 = vld [vmem:[#allocation7 + $0xe50] sm:$0xff] }
 0x216   :  { %v679_v58 = vld [vmem:[#allocation7 + $0xe70] sm:$0xff] }
 0x217   :  { %v4528_v36 = vcombine.high %v675_v40, %v679_v58  ;;  %v4527_v41 = vcombine.low %v675_v40, %v679_v58  ;;  %v749_v58 = vsub.s32 4, %v4918_v10 }
 0x218   :  { %3791 = vmatpush1.bf16.msra.mxu0 %v4487_v35  ;;  %3955 = vmatpush1.bf16.msra.mxu1 %v4489_v37  ;;  %v4521_v35 = vcombine.low %v668_v39, %v672_v20  ;;  %v4530_v37 = vcombine.high %v676_v33, %v680_v45  ;;  %v727_v39 = vld [vmem:[#allocation7 + $0xff0] sm:$0xff]  ;;  %v724_v20 = vld [vmem:[#allocation7 + $0xfd8] sm:$0xff] }
 0x219   :  { %3792 = vmatprep.subr.bf16.mxu0 %v4496_v9  ;;  %3956 = vmatprep.subr.bf16.mxu1 %v4498_v55  ;;  %v687_v9 = vld [vmem:[#allocation7 + $0xeb0] sm:$0xff]  ;;  %v684_v55 = vld [vmem:[#allocation7 + $0xe98] sm:$0xff] }
 0x21a   :  { %v3488_v56 = vpop.f32.mrb[0].mxu0  ;;  %v3652_v2 = vpop.f32.mrb[0].mxu1  ;;  %v4536_v46 = vcombine.high %v683_v38, %v687_v9  ;;  %v4538_v51 = vcombine.high %v684_v55, %v688_v32 }
 0x21b   :  { %v4579_v61 = vadd.f32 %v3488_v56, %v734_v43  ;;  %v3490_v42 = vpop.f32.mrb[1].mxu0  ;;  %v4581_v63 = vadd.f32 %v3652_v2, %v742_v59  ;;  %v3654_v21 = vpop.f32.mrb[1].mxu1  ;;  %v4529_v43 = vcombine.low %v676_v33, %v680_v45  ;;  %v691_v59 = vld [vmem:[#allocation7 + $0xed0] sm:$0xff]  ;;  %v704_v2 = vld [vmem:[#allocation7 + $0xf38] sm:$0xff]  ;;  %v753_v33 = vsub.s32 5, %v4918_v10 }
 0x21c   :  { %v4580_v5 = vadd.f32 %v3490_v42, %v738_v47  ;;  %v3492_v0 = vpop.f32.mrb[2].mxu0  ;;  %3793 = vmatpush1.bf16.msra.mxu0 %v4495_v48  ;;  %v4582_v11 = vadd.f32 %v3654_v21, %v746_v62  ;;  %v3656_v28 = vpop.f32.mrb[2].mxu1  ;;  %3957 = vmatpush1.bf16.msra.mxu1 %v4497_v49  ;;  %v695_v47 = vld [vmem:[#allocation7 + $0xef0] sm:$0xff]  ;;  %v692_v48 = vld [vmem:[#allocation7 + $0xed8] sm:$0xff]  ;;  %v4535_v49 = vcombine.low %v683_v38, %v687_v9  ;;  %v761_v45 = vsub.s32 7, %v4918_v10 }
 0x21d   :  { %v3987_v8 = vmax.f32 %v4579_v61, 0.0  ;;  %v3493_v12 = vpop.f32.mrb[3].mxu0  ;;  %3794 = vmatprep.subr.bf16.mxu0 %v4504_v50  ;;  %v3989_v16 = vmax.f32 %v4581_v63, 0.0  ;;  %v3657_v26 = vpop.f32.mrb[3].mxu1  ;;  %3958 = vmatprep.subr.bf16.mxu1 %v4506_v53  ;;  %v696_v62 = vld [vmem:[#allocation7 + $0xef8] sm:$0xff]  ;;  %v4537_v50 = vcombine.low %v684_v55, %v688_v32  ;;  %v4544_v56 = vcombine.high %v691_v59, %v695_v47  ;;  %v711_v21 = vld [vmem:[#allocation7 + $0xf70] sm:$0xff] }
 0x21e   :  { %v3988_v14 = vmax.f32 %v4580_v5, 0.0  ;;  %v3990_v52 = vmax.f32 %v4582_v11, 0.0  ;;  %v4546_v53 = vcombine.high %v692_v48, %v696_v62  ;;  %v700_v61 = vld [vmem:[#allocation7 + $0xf18] sm:$0xff]  ;;  %v4543_v42 = vcombine.low %v691_v59, %v695_v47  ;;  %v707_v5 = vld [vmem:[#allocation7 + $0xf50] sm:$0xff] }
 0x21f   :  { %v4545_v3 = vcombine.low %v692_v48, %v696_v62  ;;  %v4554_v63 = vcombine.high %v700_v61, %v704_v2  ;;  %v708_v0 = vld [vmem:[#allocation7 + $0xf58] sm:$0xff]  ;;  %v4553_v11 = vcombine.low %v700_v61, %v704_v2  ;;  %v4560_v28 = vcombine.high %v707_v5, %v711_v21 }
 0x220   :  { %v4003_v22 = vcombine.low %v3987_v8, %v3988_v14  ;;  %3795 = vmatpush1.bf16.msra.mxu0 %v4503_v1  ;;  %v4004_v34 = vcombine.low %v3989_v16, %v3990_v52  ;;  %3959 = vmatpush1.bf16.msra.mxu1 %v4505_v13  ;;  %v712_v1 = vld [vmem:[#allocation7 + $0xf78] sm:$0xff]  ;;  %v4551_v8 = vcombine.low %v699_v57, %v703_v60  ;;  %v715_v13 = vld [vmem:[#allocation7 + $0xf90] sm:$0xff] }
 0x221   :  { %3796 = vmatprep.subr.bf16.mxu0 %v4512_v7  ;;  %3960 = vmatprep.subr.bf16.mxu1 %v4514_v18  ;;  %v4562_v12 = vcombine.high %v708_v0, %v712_v1  ;;  %v719_v7 = vld [vmem:[#allocation7 + $0xfb0] sm:$0xff]  ;;  %v716_v16 = vld [vmem:[#allocation7 + $0xf98] sm:$0xff]  ;;  %v4559_v26 = vcombine.low %v707_v5, %v711_v21  ;;  %v4561_v18 = vcombine.low %v708_v0, %v712_v1 }
 0x222   :  { %v4011_v25 = vrot.slane %v4003_v22, %v4925_v30  ;;  %v4018_v29 = vrot.slane %v4004_v34, %v4925_v30  ;;  %v720_v14 = vld [vmem:[#allocation7 + $0xfb8] sm:$0xff]  ;;  %v4568_v19 = vcombine.high %v715_v13, %v719_v7  ;;  %v723_v52 = vld [vmem:[#allocation7 + $0xfd0] sm:$0xff] }
 0x223   :  { %v4570_v6 = vcombine.high %v716_v16, %v720_v14  ;;  %v728_v22 = vld [vmem:[#allocation7 + $0xff8] sm:$0xff]  ;;  %v4569_v34 = vcombine.low %v716_v16, %v720_v14 }
 0x224   :  { %3797 = vmatpush1.bf16.msra.mxu0 %v4511_v15  ;;  %3961 = vmatpush1.bf16.msra.mxu1 %v4513_v23  ;;  %v4019_v54 = vcombine.low %v4011_v25, %v4018_v29  ;;  %v4567_v15 = vcombine.low %v715_v13, %v719_v7  ;;  %v4576_v23 = vcombine.high %v723_v52, %v727_v39  ;;  %v757_v25 = vsub.s32 6, %v4918_v10 }
 0x225   :  { %3798 = vmatprep.subr.bf16.mxu0 %v4520_v24  ;;  %3962 = vmatprep.subr.bf16.mxu1 %v4522_v27  ;;  %v4578_v24 = vcombine.high %v724_v20, %v728_v22  ;;  %v4575_v27 = vcombine.low %v723_v52, %v727_v39  ;;  %v4577_v40 = vcombine.low %v724_v20, %v728_v22 }
 0x226   :  { %4039 = vst [vmem:[#allocation10] sm:$0xff] %v4019_v54  ;;  %v750_v29 = vrot.slane %v5037_v44, %v749_v58 }
 0x228   :  { %3799 = vmatpush1.bf16.msra.mxu0 %v4519_v31  ;;  %3963 = vmatpush1.bf16.msra.mxu1 %v4521_v35  ;;  %v758_v31 = vrot.slane %v5037_v44, %v757_v25  ;;  %v754_v35 = vrot.slane %v5037_v44, %v753_v33 }
 0x229   :  { %3800 = vmatprep.subr.bf16.mxu0 %v4528_v36  ;;  %3964 = vmatprep.subr.bf16.mxu1 %v4530_v37  ;;  %v762_v36 = vrot.slane %v5037_v44, %v761_v45 }
 0x22c   :  { %3801 = vmatpush1.bf16.msra.mxu0 %v4527_v41  ;;  %3965 = vmatpush1.bf16.msra.mxu1 %v4529_v43 }
 0x22d   :  { %3802 = vmatprep.subr.bf16.mxu0 %v4536_v46  ;;  %3966 = vmatprep.subr.bf16.mxu1 %v4538_v51 }
 0x230   :  { %3803 = vmatpush1.bf16.msra.mxu0 %v4535_v49  ;;  %3967 = vmatpush1.bf16.msra.mxu1 %v4537_v50 }
 0x231   :  { %3804 = vmatprep.subr.bf16.mxu0 %v4544_v56  ;;  %3968 = vmatprep.subr.bf16.mxu1 %v4546_v53 }
 0x234   :  { %3805 = vmatpush1.bf16.msra.mxu0 %v4543_v42  ;;  %3969 = vmatpush1.bf16.msra.mxu1 %v4545_v3 }
 0x235   :  { %3806 = vmatprep.subr.bf16.mxu0 %v4552_v4  ;;  %3970 = vmatprep.subr.bf16.mxu1 %v4554_v63 }
 0x238   :  { %3807 = vmatpush1.bf16.msra.mxu0 %v4551_v8  ;;  %3971 = vmatpush1.bf16.msra.mxu1 %v4553_v11 }
 0x239   :  { %3808 = vmatprep.subr.bf16.mxu0 %v4560_v28  ;;  %3972 = vmatprep.subr.bf16.mxu1 %v4562_v12 }
 0x23c   :  { %3809 = vmatpush1.bf16.msra.mxu0 %v4559_v26  ;;  %3973 = vmatpush1.bf16.msra.mxu1 %v4561_v18 }
 0x23d   :  { %3810 = vmatprep.subr.bf16.mxu0 %v4568_v19  ;;  %3974 = vmatprep.subr.bf16.mxu1 %v4570_v6 }
 0x240   :  { %3811 = vmatpush1.bf16.msra.mxu0 %v4567_v15  ;;  %3975 = vmatpush1.bf16.msra.mxu1 %v4569_v34 }
 0x241   :  { %3812 = vmatprep.subr.bf16.mxu0 %v4576_v23  ;;  %3976 = vmatprep.subr.bf16.mxu1 %v4578_v24 }
 0x244   :  { %3813 = vmatpush1.bf16.msra.mxu0 %v4575_v27  ;;  %3977 = vmatpush1.bf16.msra.mxu1 %v4577_v40 }
 0x247   :  { %3815 = vmatmul.mubr.bf16.vlgmr.msra.gmra.mrb[4].mxu0 %v5018_v17  ;;  %3979 = vmatmul.mubr.bf16.vlgmr.msra.gmra.mrb[4].mxu1 %v5018_v17 }
 0x31a   :  { %v3816_v54 = vpop.f32.mrb[4].mxu0  ;;  %v3980_v38 = vpop.f32.mrb[4].mxu1 }
 0x31b   :  { %v4583_v37 = vadd.f32 %v3816_v54, %v750_v29  ;;  %v3818_v17 = vpop.f32.mrb[5].mxu0  ;;  %v4585_v9 = vadd.f32 %v3980_v38, %v758_v31  ;;  %v3982_v32 = vpop.f32.mrb[5].mxu1 }
 0x31c   :  { %v4584_v55 = vadd.f32 %v3818_v17, %v754_v35  ;;  %v3820_v41 = vpop.f32.mrb[6].mxu0  ;;  %v4586_v46 = vadd.f32 %v3982_v32, %v762_v36  ;;  %v3984_v51 = vpop.f32.mrb[6].mxu1 }
 0x31d   :  { %v3991_v43 = vmax.f32 %v4583_v37, 0.0  ;;  %v3821_v10 = vpop.f32.mrb[7].mxu0  ;;  %v3993_v59 = vmax.f32 %v4585_v9, 0.0  ;;  %v3985_v48 = vpop.f32.mrb[7].mxu1 }
 0x31e   :  { %v3992_v47 = vmax.f32 %v4584_v55, 0.0  ;;  %v3994_v62 = vmax.f32 %v4586_v46, 0.0 }
 0x320   :  { %v4020_v49 = vcombine.low %v3991_v43, %v3992_v47  ;;  %v4021_v50 = vcombine.low %v3993_v59, %v3994_v62 }
 0x322   :  { %v4028_v44 = vrot.slane %v4020_v49, %v4925_v30  ;;  %v4035_v56 = vrot.slane %v4021_v50, %v4925_v30 }
 0x324   :  { %v4036_v53 = vcombine.low %v4028_v44, %v4035_v56 }
 0x326   :  { %4040 = vst [vmem:[#allocation10 + $0x8] sm:$0xff] %v4036_v53 }
 0x327   :  { %4732 = shalt.err (!%p4729_p3)
}
 0x328   :  { %s4733_s22 = scalar_lea.hbm %s5076_s4, 256 }
 0x329   :  { %p4734_p4 = scmp.ne.s32.totalorder %s5076_s4, %s4733_s22  ;;  %p4737_p5 = scmp.lt.u32.totalorder %s4733_s22, %s5076_s4 }
 0x32b   :  { %p4739_p6 = pnand %p4737_p5, %p4734_p4 }
 0x32d   :  { %4742 = shalt.err (!%p4739_p6)
}
 0x32e   :  { %4050 = dma.vmem_to_hbm [thread:$0]  %s4048_s19, 256, %s5076_s4, [#allocation4]  }
 0x32f   :  { %4749 = dma.done.wait [#allocation4], 256  }
 0x330   :  { %4750 = vsyncadd [#allocation4], 4294967040 }
 0x331   :  { %4054 = vsyncpa [#allocation3], 1 }
 0x332   :  { %4055 = vsyncpa [#allocation8], 1 }
 0x333   :  { %4056 = vsyncpa [#allocation4], 1 }
 0x334   :  { %4057 = vsyncpa [#allocation5], 1 }

</bundles_post_ra>
